<compile_context>
chip_gen: v7x
topology: tpu7x:2x2x1
jax: 0.10.0
libtpu: 0.0.40
codegen_flags: <defaults>
</compile_context>

<pallas_src>
import math
import functools

import jax
import jax.numpy as jnp
from jax.experimental import pallas as pl
from jax.experimental.pallas import tpu as pltpu

NUM_LAYERS = 4
LR_MUL = 0.01
NEG_SLOPE = 0.2
ACT_SCALE = 2.0 ** 0.5
PIXELNORM_EPS = 1e-8

_TILE_B_CAP = 1024                 # rows per batch tile for large B
_VMEM_LIMIT_BYTES = 32 * 1024 * 1024


@functools.lru_cache(maxsize=1)
def _bf16_pointwise_ok():
    """bf16 pointwise (bias-add / lrelu) is a win only where the VPU has bf16 (v6e/v7x)."""
    try:
        kind = jax.devices()[0].device_kind.lower()
    except Exception:
        return False
    return not any(t in kind for t in ("v2", "v3", "v4", "v5"))


def _mapper_kernel(x_ref, w_ref, b_ref, o_ref, *, bf16_pointwise):
    """Fused PixelNorm + 4x (EqualLinear + fused leaky-relu).

    x_ref: (TB, D)        f32 input tile (batch on sublanes, latent on lanes)
    w_ref: (L, D, D)      bf16 weights, pre-transposed to (in, out); eq_scale and
                          the previous layer's sqrt(2) folded in
    b_ref: (L, 1, D)      f32 biases, lr_mul folded in
    o_ref: (TB, D)        output tile
    """
    x = x_ref[...].astype(jnp.float32)

    # --- PixelNorm (always f32) ---
    ms = jnp.mean(x * x, axis=-1, keepdims=True)
    h = x * jax.lax.rsqrt(ms + PIXELNORM_EPS)

    pw_dtype = jnp.bfloat16 if bf16_pointwise else jnp.float32
    h = h.astype(jnp.bfloat16)                      # MXU operand for layer 0

    # --- 4 EqualLinear layers, statically unrolled ---
    for l in range(NUM_LAYERS):
        w = w_ref[l]                                # (D, D) bf16
        b = b_ref[l].astype(pw_dtype)               # (1, D)
        out = jnp.dot(h, w, preferred_element_type=jnp.float32)
        out = out.astype(pw_dtype) + b
        # leaky_relu via maximum (valid since 0 < slope < 1); sqrt(2) of layers
        # 0..2 is folded into the next layer's weights, only the last layer
        # applies it explicitly.
        h = jnp.maximum(out, out * NEG_SLOPE)
        if l < NUM_LAYERS - 1:
            h = h.astype(jnp.bfloat16)              # no-op when pw_dtype is bf16
        else:
            h = h.astype(jnp.float32) * ACT_SCALE

    o_ref[...] = h.astype(o_ref.dtype)


def prepare_mapper_params(weights, biases, lr_mul=LR_MUL):
    """One-time parameter prep (outside the hot path).

    weights: (L, D_out, D_in) PyTorch layout, f32.  biases: (L, D_out) f32.
    Returns:
      w_prep: (L, D_in, D_out) bf16, transposed to (in, out), with
              eq_scale = (1/sqrt(D_in))*lr_mul folded in, and the previous
              layer's sqrt(2) activation scale folded into layers 1..L-1.
      b_prep: (L, 1, D_out) f32, lr_mul folded in.
    """
    L, D_out, D_in = weights.shape
    eq_scale = (1.0 / math.sqrt(D_in)) * lr_mul
    # lrelu(out_{l-1}) * sqrt(2) @ W_l  ==  lrelu(out_{l-1}) @ (sqrt(2) * W_l)
    layer_scale = jnp.asarray([eq_scale] + [eq_scale * ACT_SCALE] * (L - 1),
                              jnp.float32)
    w = jnp.transpose(weights, (0, 2, 1)).astype(jnp.float32)
    w_prep = (w * layer_scale[:, None, None]).astype(jnp.bfloat16)
    b_prep = (biases.astype(jnp.float32) * lr_mul).reshape(L, 1, D_out)
    return w_prep, b_prep


def _pick_tile_b(B, cap=_TILE_B_CAP):
    """Batch tile size.

    B <= cap: a single grid step (full-array block, exempt from the sublane rule).
    This keeps the MXU M-dim as large as the batch allows, avoids per-step
    pipeline overhead on single-TC chips, and avoids duplicating resident-weight
    DMA under v7x megacore for small batches.
    B > cap: biggest multiple-of-8 tile <= cap that divides B.
    """
    if B <= cap:
        return B
    tb0 = (min(cap, B) // 8) * 8
    for tb in range(tb0, 7, -8):
        if B % tb == 0:
            return tb
    return B  # no clean divisor: fall back to a single (large) step


@functools.lru_cache(maxsize=None)
def _build_mapper_call(B, D, tile_b, out_dtype_name, bf16_pointwise):
    out_dtype = jnp.dtype(out_dtype_name)
    kernel = functools.partial(_mapper_kernel, bf16_pointwise=bf16_pointwise)

    cost = pl.CostEstimate(
        flops=2 * B * D * D * NUM_LAYERS,
        transcendentals=0,
        bytes_accessed=(B * D * 4) * 2            # x in + out (f32)
                       + NUM_LAYERS * D * D * 2   # bf16 weights
                       + NUM_LAYERS * D * 4,      # f32 biases
    )

    return pl.pallas_call(
        kernel,
        out_shape=jax.ShapeDtypeStruct((B, D), out_dtype),
        grid_spec=pltpu.PrefetchScalarGridSpec(
            num_scalar_prefetch=0,
            grid=(B // tile_b,),
            in_specs=[
                pl.BlockSpec((tile_b, D), lambda i: (i, 0)),              # x tile
                pl.BlockSpec((NUM_LAYERS, D, D), lambda i: (0, 0, 0)),    # weights (grid-invariant)
                pl.BlockSpec((NUM_LAYERS, 1, D), lambda i: (0, 0, 0)),    # biases  (grid-invariant)
            ],
            out_specs=pl.BlockSpec((tile_b, D), lambda i: (i, 0)),
        ),
        compiler_params=pltpu.CompilerParams(
            dimension_semantics=("parallel",),
            vmem_limit_bytes=_VMEM_LIMIT_BYTES,
        ),
        cost_estimate=cost,
    )


@functools.partial(jax.jit, static_argnames=("tile_b",))
def mapper_forward(x, w_prep, b_prep, *, tile_b=None):
    """x: (B, D) f32. w_prep/b_prep from prepare_mapper_params. Returns (B, D)."""
    B, D = x.shape
    L, D_in, D_out = w_prep.shape
    assert L == NUM_LAYERS and D_in == D and D_out == D

    if tile_b is None:
        tile_b = _pick_tile_b(B)
    assert B % tile_b == 0

    fn = _build_mapper_call(B, D, int(tile_b), jnp.dtype(x.dtype).name,
                            _bf16_pointwise_ok())
    return fn(x, w_prep, b_prep)


def _reference_forward(x, weights, biases, lr_mul=LR_MUL):
    """Pure-JAX f32 reference mirroring the PyTorch module."""
    x = x.astype(jnp.float32)
    D = x.shape[-1]
    h = x * jax.lax.rsqrt(jnp.mean(x * x, axis=-1, keepdims=True) + PIXELNORM_EPS)
    eq_scale = (1.0 / math.sqrt(D)) * lr_mul
    for l in range(NUM_LAYERS):
        out = h @ (weights[l] * eq_scale).T
        out = out + biases[l] * lr_mul
        h = jnp.where(out >= 0.0, out, out * NEG_SLOPE) * ACT_SCALE
    return h


if __name__ == "__main__":
    # latent_dim=512 (module default); B=16 keeps it a small single-step grid.
    B, D = 16, 512

    key = jax.random.PRNGKey(0)
    kx, kw = jax.random.split(key)

    x = jax.random.normal(kx, (B, D), dtype=jnp.float32)

    # EqualLinear.__init__: weight = randn(out, in) / lr_mul ; bias = zeros (bias_init=0)
    wkeys = jax.random.split(kw, NUM_LAYERS)
    weights = jnp.stack(
        [jax.random.normal(k, (D, D), dtype=jnp.float32) / LR_MUL for k in wkeys]
    )                                              # (L, D_out, D_in), PyTorch layout
    biases = jnp.zeros((NUM_LAYERS, D), dtype=jnp.float32)

    # One-time prep (transpose + scale/sqrt(2) folding + bf16 cast), outside the hot path.
    w_prep, b_prep = prepare_mapper_params(weights, biases)

    out = jax.block_until_ready(mapper_forward(x, w_prep, b_prep))

    ref = _reference_forward(x, weights, biases)
    assert out.shape == (B, D)
    assert bool(jnp.isfinite(out).all())
    rel = float(jnp.linalg.norm(out - ref) / (jnp.linalg.norm(ref) + 1e-12))
    assert rel < 3e-2, f"relative error vs f32 reference too large: {rel}"

    print("KERNEL_OK")
</pallas_src>

<mosaic_0001>
module attributes {stable_mosaic.version = 11 : i64} {
  func.func @_mapper_kernel(%arg0: i32, %arg1: memref<16x512xf32, #tpu.memory_space<vmem>>, %arg2: memref<4x512x512xbf16, #tpu.memory_space<vmem>>, %arg3: memref<4x1x512xf32, #tpu.memory_space<vmem>>, %arg4: memref<16x512xf32, #tpu.memory_space<vmem>>) attributes {dimension_semantics = [#tpu.dimension_semantics<parallel>], iteration_bounds = array<i64: 1>, scalar_prefetch = 0 : i64, scratch_operands = 0 : i64, tpu.core_type = #tpu.core_type<tc>, window_params = [{transform_indices = @transform_0, window_bounds = array<i64: 16, 512>}, {pipeline_mode = #tpu.pipeline_mode<synchronous>, transform_indices = @transform_1, window_bounds = array<i64: 4, 512, 512>}, {pipeline_mode = #tpu.pipeline_mode<synchronous>, transform_indices = @transform_2, window_bounds = array<i64: 4, 1, 512>}, {transform_indices = @transform_3, window_bounds = array<i64: 16, 512>}]} {
    %c0 = arith.constant 0 : index
    %c0_0 = arith.constant 0 : index
    %0 = vector.load %arg1[%c0, %c0_0] : memref<16x512xf32, #tpu.memory_space<vmem>>, vector<16x512xf32>
    %1 = arith.mulf %0, %0 : vector<16x512xf32>
    %cst = arith.constant dense<0.000000e+00> : vector<16xf32>
    %2 = vector.multi_reduction <add>, %1, %cst [1] : vector<16x512xf32> to vector<16xf32>
    %3 = vector.shape_cast %2 : vector<16xf32> to vector<16x1xf32>
    %cst_1 = arith.constant 5.120000e+02 : f32
    %4 = vector.broadcast %cst_1 : f32 to vector<16x1xf32>
    %5 = arith.divf %3, %4 : vector<16x1xf32>
    %cst_2 = arith.constant 9.99999993E-9 : f32
    %6 = vector.broadcast %cst_2 : f32 to vector<16x1xf32>
    %7 = arith.addf %5, %6 : vector<16x1xf32>
    %8 = math.rsqrt %7 : vector<16x1xf32>
    %9 = vector.broadcast %8 : vector<16x1xf32> to vector<16x512xf32>
    %10 = arith.mulf %0, %9 : vector<16x512xf32>
    %11 = arith.truncf %10 : vector<16x512xf32> to vector<16x512xbf16>
    %c0_3 = arith.constant 0 : index
    %c0_4 = arith.constant 0 : index
    %c0_5 = arith.constant 0 : index
    %12 = vector.load %arg2[%c0_3, %c0_4, %c0_5] : memref<4x512x512xbf16, #tpu.memory_space<vmem>>, vector<1x512x512xbf16>
    %13 = vector.shape_cast %12 : vector<1x512x512xbf16> to vector<512x512xbf16>
    %c0_6 = arith.constant 0 : index
    %c0_7 = arith.constant 0 : index
    %c0_8 = arith.constant 0 : index
    %14 = vector.load %arg3[%c0_6, %c0_7, %c0_8] : memref<4x1x512xf32, #tpu.memory_space<vmem>>, vector<1x1x512xf32>
    %15 = vector.shape_cast %14 : vector<1x1x512xf32> to vector<1x512xf32>
    %16 = arith.truncf %15 : vector<1x512xf32> to vector<1x512xbf16>
    %cst_9 = arith.constant dense<0.000000e+00> : vector<16x512xf32>
    %17 = tpu.matmul %11, %13, %cst_9 {dimension_numbers = #tpu.dot_dimension_numbers<[1], [0], [0], [1], [0, 0, 1, 1], [], []>} : vector<16x512xbf16>, vector<512x512xbf16>, vector<16x512xf32> -> vector<16x512xf32>
    %18 = arith.truncf %17 : vector<16x512xf32> to vector<16x512xbf16>
    %19 = vector.broadcast %16 : vector<1x512xbf16> to vector<16x512xbf16>
    %20 = arith.addf %18, %19 : vector<16x512xbf16>
    %cst_10 = arith.constant 2.001950e-01 : bf16
    %21 = vector.broadcast %cst_10 : bf16 to vector<16x512xbf16>
    %22 = arith.mulf %20, %21 : vector<16x512xbf16>
    %23 = arith.maximumf %20, %22 : vector<16x512xbf16>
    %c1 = arith.constant 1 : index
    %c0_11 = arith.constant 0 : index
    %c0_12 = arith.constant 0 : index
    %24 = vector.load %arg2[%c1, %c0_11, %c0_12] : memref<4x512x512xbf16, #tpu.memory_space<vmem>>, vector<1x512x512xbf16>
    %25 = vector.shape_cast %24 : vector<1x512x512xbf16> to vector<512x512xbf16>
    %c1_13 = arith.constant 1 : index
    %c0_14 = arith.constant 0 : index
    %c0_15 = arith.constant 0 : index
    %26 = vector.load %arg3[%c1_13, %c0_14, %c0_15] : memref<4x1x512xf32, #tpu.memory_space<vmem>>, vector<1x1x512xf32>
    %27 = vector.shape_cast %26 : vector<1x1x512xf32> to vector<1x512xf32>
    %28 = arith.truncf %27 : vector<1x512xf32> to vector<1x512xbf16>
    %cst_16 = arith.constant dense<0.000000e+00> : vector<16x512xf32>
    %29 = tpu.matmul %23, %25, %cst_16 {dimension_numbers = #tpu.dot_dimension_numbers<[1], [0], [0], [1], [0, 0, 1, 1], [], []>} : vector<16x512xbf16>, vector<512x512xbf16>, vector<16x512xf32> -> vector<16x512xf32>
    %30 = arith.truncf %29 : vector<16x512xf32> to vector<16x512xbf16>
    %31 = vector.broadcast %28 : vector<1x512xbf16> to vector<16x512xbf16>
    %32 = arith.addf %30, %31 : vector<16x512xbf16>
    %cst_17 = arith.constant 2.001950e-01 : bf16
    %33 = vector.broadcast %cst_17 : bf16 to vector<16x512xbf16>
    %34 = arith.mulf %32, %33 : vector<16x512xbf16>
    %35 = arith.maximumf %32, %34 : vector<16x512xbf16>
    %c2 = arith.constant 2 : index
    %c0_18 = arith.constant 0 : index
    %c0_19 = arith.constant 0 : index
    %36 = vector.load %arg2[%c2, %c0_18, %c0_19] : memref<4x512x512xbf16, #tpu.memory_space<vmem>>, vector<1x512x512xbf16>
    %37 = vector.shape_cast %36 : vector<1x512x512xbf16> to vector<512x512xbf16>
    %c2_20 = arith.constant 2 : index
    %c0_21 = arith.constant 0 : index
    %c0_22 = arith.constant 0 : index
    %38 = vector.load %arg3[%c2_20, %c0_21, %c0_22] : memref<4x1x512xf32, #tpu.memory_space<vmem>>, vector<1x1x512xf32>
    %39 = vector.shape_cast %38 : vector<1x1x512xf32> to vector<1x512xf32>
    %40 = arith.truncf %39 : vector<1x512xf32> to vector<1x512xbf16>
    %cst_23 = arith.constant dense<0.000000e+00> : vector<16x512xf32>
    %41 = tpu.matmul %35, %37, %cst_23 {dimension_numbers = #tpu.dot_dimension_numbers<[1], [0], [0], [1], [0, 0, 1, 1], [], []>} : vector<16x512xbf16>, vector<512x512xbf16>, vector<16x512xf32> -> vector<16x512xf32>
    %42 = arith.truncf %41 : vector<16x512xf32> to vector<16x512xbf16>
    %43 = vector.broadcast %40 : vector<1x512xbf16> to vector<16x512xbf16>
    %44 = arith.addf %42, %43 : vector<16x512xbf16>
    %cst_24 = arith.constant 2.001950e-01 : bf16
    %45 = vector.broadcast %cst_24 : bf16 to vector<16x512xbf16>
    %46 = arith.mulf %44, %45 : vector<16x512xbf16>
    %47 = arith.maximumf %44, %46 : vector<16x512xbf16>
    %c3 = arith.constant 3 : index
    %c0_25 = arith.constant 0 : index
    %c0_26 = arith.constant 0 : index
    %48 = vector.load %arg2[%c3, %c0_25, %c0_26] : memref<4x512x512xbf16, #tpu.memory_space<vmem>>, vector<1x512x512xbf16>
    %49 = vector.shape_cast %48 : vector<1x512x512xbf16> to vector<512x512xbf16>
    %c3_27 = arith.constant 3 : index
    %c0_28 = arith.constant 0 : index
    %c0_29 = arith.constant 0 : index
    %50 = vector.load %arg3[%c3_27, %c0_28, %c0_29] : memref<4x1x512xf32, #tpu.memory_space<vmem>>, vector<1x1x512xf32>
    %51 = vector.shape_cast %50 : vector<1x1x512xf32> to vector<1x512xf32>
    %52 = arith.truncf %51 : vector<1x512xf32> to vector<1x512xbf16>
    %cst_30 = arith.constant dense<0.000000e+00> : vector<16x512xf32>
    %53 = tpu.matmul %47, %49, %cst_30 {dimension_numbers = #tpu.dot_dimension_numbers<[1], [0], [0], [1], [0, 0, 1, 1], [], []>} : vector<16x512xbf16>, vector<512x512xbf16>, vector<16x512xf32> -> vector<16x512xf32>
    %54 = arith.truncf %53 : vector<16x512xf32> to vector<16x512xbf16>
    %55 = vector.broadcast %52 : vector<1x512xbf16> to vector<16x512xbf16>
    %56 = arith.addf %54, %55 : vector<16x512xbf16>
    %cst_31 = arith.constant 2.001950e-01 : bf16
    %57 = vector.broadcast %cst_31 : bf16 to vector<16x512xbf16>
    %58 = arith.mulf %56, %57 : vector<16x512xbf16>
    %59 = arith.maximumf %56, %58 : vector<16x512xbf16>
    %60 = arith.extf %59 : vector<16x512xbf16> to vector<16x512xf32>
    %cst_32 = arith.constant 1.41421354 : f32
    %61 = vector.broadcast %cst_32 : f32 to vector<16x512xf32>
    %62 = arith.mulf %60, %61 : vector<16x512xf32>
    %c0_33 = arith.constant 0 : index
    %c0_34 = arith.constant 0 : index
    %63 = vector.load %arg4[%c0_33, %c0_34] : memref<16x512xf32, #tpu.memory_space<vmem>>, vector<16x512xf32>
    tpu.vector_store %arg4[%c0_33, %c0_34], %62 {strides = array<i32>} : memref<16x512xf32, #tpu.memory_space<vmem>>, vector<16x512xf32>,
    return
  }
  func.func @transform_0(%arg0: i32) -> (i32, i32) {
    %c0_i32 = arith.constant 0 : i32
    %c0_i32_0 = arith.constant 0 : i32
    return %arg0, %c0_i32 : i32, i32
  }
  func.func @transform_1(%arg0: i32) -> (i32, i32, i32) {
    %c0_i32 = arith.constant 0 : i32
    %c0_i32_0 = arith.constant 0 : i32
    %c0_i32_1 = arith.constant 0 : i32
    %c0_i32_2 = arith.constant 0 : i32
    return %c0_i32, %c0_i32_0, %c0_i32_1 : i32, i32, i32
  }
  func.func @transform_2(%arg0: i32) -> (i32, i32, i32) {
    %c0_i32 = arith.constant 0 : i32
    %c0_i32_0 = arith.constant 0 : i32
    %c0_i32_1 = arith.constant 0 : i32
    %c0_i32_2 = arith.constant 0 : i32
    return %c0_i32, %c0_i32_0, %c0_i32_1 : i32, i32, i32
  }
  func.func @transform_3(%arg0: i32) -> (i32, i32) {
    %c0_i32 = arith.constant 0 : i32
    %c0_i32_0 = arith.constant 0 : i32
    return %arg0, %c0_i32 : i32, i32
  }
}

</mosaic_0001>

<bundles_post_ra>
// kernel: mapper_forward.1
= control target key start
LH: loop header
LB: loop body
LE: loop exit
PB: predicated region body
PF: predicated region fallthrough
CT: control target
= control target key end

     0   :  { %8 = vsyncpa [#allocation3], 0  ;;  %s5790_s0 = inlined_call_operand.hbm [shape: f32[16,512], index: 0, kind: input, shape index: {}]   ;;  %s5791_s1 = inlined_call_operand.hbm [shape: bf16[4,512,512], index: 1, kind: input, shape index: {}]   ;;  %s5792_s2 = inlined_call_operand.hbm [shape: f32[4,1,512], index: 2, kind: input, shape index: {}]   ;;  %s5793_s3 = inlined_call_operand.hbm [shape: f32[16,512], index: 3, kind: output, shape index: {}]  }
   0x1   :  { %9 = vsyncpa [#allocation6], 0 }
   0x2   :  { %10 = vsyncpa [#allocation4], 0  ;;  %s5610_s12 = smov [#allocation5]   ;;  %s5516_s16 = scalar_lea.hbm %s5791_s1, 65536 }
   0x3   :  { %s28_s13 = sshll.u32 %s5610_s12, 4  ;;  %p5517_p0 = scmp.ne.s32.totalorder %s5791_s1, %s5516_s16  ;;  %s29_s13 = int_to_ptr.vmem [resolvable:$true] %s28_s13 }
   0x4   :  { %p5520_p1 = scmp.lt.u32.totalorder %s5516_s16, %s5791_s1 }
   0x6   :  { %p5522_p2 = pnand %p5520_p1, %p5517_p0 }
   0x8   :  { %5525 = shalt.err (!%p5522_p2)
}
   0x9   :  { %s5526_s21 = scalar_lea.vmem %s29_s13, 65536  ;;  %p5531_p4 = scmp.lt.s32.totalorder %s29_s13, %s29_s13 }
   0xa   :  { %p5527_p3 = scmp.ne.s32.totalorder %s29_s13, %s5526_s21  ;;  %p5532_p5 = scmp.lt.s32.totalorder %s5526_s21, %s5526_s21 }
   0xc   :  { %p5533_p6 = por %p5532_p5, %p5531_p4 }
   0xe   :  { %p5534_p7 = pnand %p5533_p6, %p5527_p3 }
  0x10   :  { %5537 = shalt.err (!%p5534_p7)
}
  0x11   :  { %s5611_s22 = smov 256   ;;  %s5612_s23 = smov 16  }
  0x12   :  { %34 = dma.hbm_to_vmem [thread:$0]  %s5791_s1, 65536, %s29_s13, [#allocation6], %s5611_s22, %s5611_s22, %s5612_s23  }
  0x13   :  { %s5613_s26 = smov [#allocation2]   ;;  %s5538_s30 = scalar_lea.hbm %s5790_s0, 1024 }
  0x14   :  { %s16_s27 = sshll.u32 %s5613_s26, 4  ;;  %p5539_p8 = scmp.ne.s32.totalorder %s5790_s0, %s5538_s30  ;;  %s17_s27 = int_to_ptr.vmem [resolvable:$true] %s16_s27 }
  0x15   :  { %p5542_p9 = scmp.lt.u32.totalorder %s5538_s30, %s5790_s0 }
  0x17   :  { %p5544_p10 = pnand %p5542_p9, %p5539_p8 }
  0x19   :  { %5547 = shalt.err (!%p5544_p10)
}
  0x1a   :  { %s5548_s8 = scalar_lea.vmem %s17_s27, 1024  ;;  %p5553_p12 = scmp.lt.s32.totalorder %s17_s27, %s17_s27 }
  0x1b   :  { %p5549_p11 = scmp.ne.s32.totalorder %s17_s27, %s5548_s8  ;;  %p5554_p13 = scmp.lt.s32.totalorder %s5548_s8, %s5548_s8 }
  0x1d   :  { %p5555_p0 = por %p5554_p13, %p5553_p12 }
  0x1f   :  { %p5556_p1 = pnand %p5555_p0, %p5549_p11 }
  0x21   :  { %5559 = shalt.err (!%p5556_p1)
}
  0x22   :  { %s5614_s1 = smov 512   ;;  %s5615_s9 = smov 32  }
  0x23   :  { %22 = dma.hbm_to_vmem [thread:$0]  %s5790_s0, 1024, %s17_s27, [#allocation3], %s5614_s1, %s5614_s1, %s5615_s9  }
  0x24   :  { %s5616_s12 = smov [#allocation7]   ;;  %s5560_s16 = scalar_lea.hbm %s5792_s2, 256 }
  0x25   :  { %s40_s13 = sshll.u32 %s5616_s12, 4  ;;  %p5561_p2 = scmp.ne.s32.totalorder %s5792_s2, %s5560_s16  ;;  %s41_s13 = int_to_ptr.vmem [resolvable:$true] %s40_s13 }
  0x26   :  { %p5564_p3 = scmp.lt.u32.totalorder %s5560_s16, %s5792_s2 }
  0x28   :  { %p5566_p4 = pnand %p5564_p3, %p5561_p2 }
  0x2a   :  { %5569 = shalt.err (!%p5566_p4)
}
  0x2b   :  { %s5570_s21 = scalar_lea.vmem %s41_s13, 256  ;;  %p5575_p6 = scmp.lt.s32.totalorder %s41_s13, %s41_s13 }
  0x2c   :  { %p5571_p5 = scmp.ne.s32.totalorder %s41_s13, %s5570_s21  ;;  %p5576_p7 = scmp.lt.s32.totalorder %s5570_s21, %s5570_s21 }
  0x2e   :  { %p5577_p8 = por %p5576_p7, %p5575_p6 }
  0x30   :  { %p5578_p9 = pnand %p5577_p8, %p5571_p5 }
  0x32   :  { %5581 = shalt.err (!%p5578_p9)
}
  0x33   :  { %s5617_s0 = smov 64   ;;  %s5618_s22 = smov 4  }
  0x34   :  { %46 = dma.hbm_to_vmem [thread:$0]  %s5792_s2, 256, %s41_s13, [#allocation6], %s5617_s0, %s5617_s0, %s5618_s22  }
  0x35   :  { %5604 = dma.done.wait [#allocation3], 1024  }
  0x36   :  { %5605 = vsyncadd [#allocation3], 4294966272 }
  0x37   :  { %5606 = dma.done.wait [#allocation6], 65792  }
  0x38   :  { %5607 = vsyncadd [#allocation6], 4294901504  ;;  %v5679_v0 = vld [vmem:[#allocation2] sm:$0xff]  ;;  %v5681_v1 = vld [vmem:[#allocation2 + $0x8] sm:$0xff]  ;;  %s5619_s2 = smov [#allocation8]  }
  0x39   :  { %v5683_v2 = vld [vmem:[#allocation2 + $0x10] sm:$0xff]  ;;  %v5685_v3 = vld [vmem:[#allocation2 + $0x18] sm:$0xff]  ;;  %v65_v4 = vmul.f32 %v5679_v0, %v5679_v0  ;;  %v66_v5 = vmul.f32 %v5681_v1, %v5681_v1  ;;  %v5693_v7 = vld [vmem:[#allocation2 + $0x20] sm:$0xff]  ;;  %s4177_s25 = sshll.u32 %s5619_s2, 4  ;;  %s4178_s25 = int_to_ptr.vmem [resolvable:$true] %s4177_s25 }
  0x3a   :  { %v67_v6 = vmul.f32 %v5683_v2, %v5683_v2  ;;  %v5695_v8 = vld [vmem:[#allocation2 + $0x28] sm:$0xff]  ;;  %v5697_v9 = vld [vmem:[#allocation2 + $0x30] sm:$0xff]  ;;  %v5699_v10 = vld [vmem:[#allocation2 + $0x38] sm:$0xff]  ;;  %v69_v11 = vmul.f32 %v5693_v7, %v5693_v7  ;;  %v68_v13 = vmul.f32 %v5685_v3, %v5685_v3  ;;  %s5582_s26 = scalar_lea.vmem %s4178_s25, 1024  ;;  %p5587_p11 = scmp.lt.s32.totalorder %s4178_s25, %s4178_s25 }
  0x3b   :  { %v70_v12 = vmul.f32 %v5695_v8, %v5695_v8  ;;  %v73_v14 = vadd.f32 %v66_v5, %v65_v4  ;;  %v71_v15 = vmul.f32 %v5697_v9, %v5697_v9  ;;  %v4744_v16 = vld [vmem:[#allocation5 + $0x4] ss:$16 sps:$4 sm:$0xff]   ;;  %v4746_v18 = vld [vmem:[#allocation5 + $0xc] ss:$16 sps:$4 sm:$0xff]   ;;  %v4748_v19 = vld [vmem:[#allocation5] ss:$16 sps:$4 sm:$0xff]   ;;  %v72_v21 = vmul.f32 %v5699_v10, %v5699_v10  ;;  %p5583_p10 = scmp.ne.s32.totalorder %s4178_s25, %s5582_s26  ;;  %p5588_p12 = scmp.lt.s32.totalorder %s5582_s26, %s5582_s26 }
  0x3c   :  { %896 = vmatprep.subr.bf16.mxu0 %v4744_v16  ;;  %v4749_v22 = vld [vmem:[#allocation5 + $0x8] ss:$16 sps:$4 sm:$0xff]   ;;  %982 = vmatprep.subr.bf16.mxu1 %v4746_v18  ;;  %v4750_v24 = vld [vmem:[#allocation5 + $0x24] ss:$16 sps:$4 sm:$0xff]   ;;  %v4752_v26 = vld [vmem:[#allocation5 + $0x2c] ss:$16 sps:$4 sm:$0xff]  }
  0x3d   :  { %v78_v17 = vadd.f32 %v70_v12, %v69_v11  ;;  %v74_v20 = vadd.f32 %v73_v14, %v67_v6  ;;  %897 = vmatpush1.bf16.msra.mxu0 %v4748_v19  ;;  %983 = vmatpush1.bf16.msra.mxu1 %v4749_v22  ;;  %v4754_v27 = vld [vmem:[#allocation5 + $0x20] ss:$16 sps:$4 sm:$0xff]   ;;  %v4755_v28 = vld [vmem:[#allocation5 + $0x28] ss:$16 sps:$4 sm:$0xff]   ;;  %v4756_v29 = vld [vmem:[#allocation5 + $0x44] ss:$16 sps:$4 sm:$0xff]   ;;  %p5589_p13 = por %p5588_p12, %p5587_p11 }
  0x3e   :  { %898 = vmatprep.subr.bf16.mxu0 %v4750_v24  ;;  %984 = vmatprep.subr.bf16.mxu1 %v4752_v26  ;;  %v4758_v31 = vld [vmem:[#allocation5 + $0x4c] ss:$16 sps:$4 sm:$0xff]   ;;  %v4760_v32 = vld [vmem:[#allocation5 + $0x40] ss:$16 sps:$4 sm:$0xff]   ;;  %v4761_v33 = vld [vmem:[#allocation5 + $0x48] ss:$16 sps:$4 sm:$0xff]  }
  0x3f   :  { %v79_v23 = vadd.f32 %v78_v17, %v71_v15  ;;  %v75_v25 = vadd.f32 %v74_v20, %v68_v13  ;;  %v4762_v34 = vld [vmem:[#allocation5 + $0x64] ss:$16 sps:$4 sm:$0xff]   ;;  %v4764_v35 = vld [vmem:[#allocation5 + $0x6c] ss:$16 sps:$4 sm:$0xff]   ;;  %v4766_v36 = vld [vmem:[#allocation5 + $0x60] ss:$16 sps:$4 sm:$0xff]   ;;  %p5590_p0 = pnand %p5589_p13, %p5583_p10 }
  0x40   :  { %v4767_v37 = vld [vmem:[#allocation5 + $0x68] ss:$16 sps:$4 sm:$0xff]   ;;  %v4768_v38 = vld [vmem:[#allocation5 + $0x84] ss:$16 sps:$4 sm:$0xff]   ;;  %v4770_v39 = vld [vmem:[#allocation5 + $0x8c] ss:$16 sps:$4 sm:$0xff]  }
  0x41   :  { %76 = vadd.xlane.f32.xlu0 %v75_v25  ;;  %v80_v30 = vadd.f32 %v79_v23, %v72_v21  ;;  %899 = vmatpush1.bf16.msra.mxu0 %v4754_v27  ;;  %v4772_v40 = vld [vmem:[#allocation5 + $0x80] ss:$16 sps:$4 sm:$0xff]   ;;  %v4773_v41 = vld [vmem:[#allocation5 + $0x88] ss:$16 sps:$4 sm:$0xff]   ;;  %v4774_v42 = vld [vmem:[#allocation5 + $0xa4] ss:$16 sps:$4 sm:$0xff]  }
  0x42   :  { %985 = vmatpush1.bf16.msra.mxu1 %v4755_v28  ;;  %900 = vmatprep.subr.bf16.mxu0 %v4756_v29  ;;  %v4776_v43 = vld [vmem:[#allocation5 + $0xac] ss:$16 sps:$4 sm:$0xff]   ;;  %v4778_v44 = vld [vmem:[#allocation5 + $0xa0] ss:$16 sps:$4 sm:$0xff]   ;;  %v4779_v45 = vld [vmem:[#allocation5 + $0xa8] ss:$16 sps:$4 sm:$0xff]  }
  0x43   :  { %986 = vmatprep.subr.bf16.mxu1 %v4758_v31  ;;  %v4780_v46 = vld [vmem:[#allocation5 + $0xc4] ss:$16 sps:$4 sm:$0xff]   ;;  %v4782_v47 = vld [vmem:[#allocation5 + $0xcc] ss:$16 sps:$4 sm:$0xff]   ;;  %v4784_v48 = vld [vmem:[#allocation5 + $0xc0] ss:$16 sps:$4 sm:$0xff]  }
  0x44   :  { %v4785_v49 = vld [vmem:[#allocation5 + $0xc8] ss:$16 sps:$4 sm:$0xff]   ;;  %v4786_v50 = vld [vmem:[#allocation5 + $0xe4] ss:$16 sps:$4 sm:$0xff]   ;;  %v4788_v51 = vld [vmem:[#allocation5 + $0xec] ss:$16 sps:$4 sm:$0xff]  }
  0x45   :  { %81 = vadd.xlane.f32.xlu0 %v80_v30  ;;  %901 = vmatpush1.bf16.msra.mxu0 %v4760_v32  ;;  %v4790_v52 = vld [vmem:[#allocation5 + $0xe0] ss:$16 sps:$4 sm:$0xff]   ;;  %v4791_v53 = vld [vmem:[#allocation5 + $0xe8] ss:$16 sps:$4 sm:$0xff]   ;;  %v4792_v54 = vld [vmem:[#allocation5 + $0x104] ss:$16 sps:$4 sm:$0xff]  }
  0x46   :  { %987 = vmatpush1.bf16.msra.mxu1 %v4761_v33  ;;  %902 = vmatprep.subr.bf16.mxu0 %v4762_v34  ;;  %v4794_v55 = vld [vmem:[#allocation5 + $0x10c] ss:$16 sps:$4 sm:$0xff]   ;;  %v4796_v56 = vld [vmem:[#allocation5 + $0x100] ss:$16 sps:$4 sm:$0xff]   ;;  %v4797_v57 = vld [vmem:[#allocation5 + $0x108] ss:$16 sps:$4 sm:$0xff]  }
  0x47   :  { %988 = vmatprep.subr.bf16.mxu1 %v4764_v35  ;;  %v4798_v58 = vld [vmem:[#allocation5 + $0x124] ss:$16 sps:$4 sm:$0xff]   ;;  %v4800_v59 = vld [vmem:[#allocation5 + $0x12c] ss:$16 sps:$4 sm:$0xff]   ;;  %v4802_v60 = vld [vmem:[#allocation5 + $0x120] ss:$16 sps:$4 sm:$0xff]  }
  0x48   :  { %v4803_v61 = vld [vmem:[#allocation5 + $0x128] ss:$16 sps:$4 sm:$0xff]   ;;  %v4804_v62 = vld [vmem:[#allocation5 + $0x144] ss:$16 sps:$4 sm:$0xff]   ;;  %v4806_v63 = vld [vmem:[#allocation5 + $0x14c] ss:$16 sps:$4 sm:$0xff]  }
  0x49   :  { %903 = vmatpush1.bf16.msra.mxu0 %v4766_v36  ;;  %v4808_v4 = vld [vmem:[#allocation5 + $0x140] ss:$16 sps:$4 sm:$0xff]   ;;  %v4809_v5 = vld [vmem:[#allocation5 + $0x148] ss:$16 sps:$4 sm:$0xff]   ;;  %v4810_v6 = vld [vmem:[#allocation5 + $0x164] ss:$16 sps:$4 sm:$0xff]  }
  0x4a   :  { %989 = vmatpush1.bf16.msra.mxu1 %v4767_v37  ;;  %904 = vmatprep.subr.bf16.mxu0 %v4768_v38  ;;  %v4812_v11 = vld [vmem:[#allocation5 + $0x16c] ss:$16 sps:$4 sm:$0xff]   ;;  %v4814_v12 = vld [vmem:[#allocation5 + $0x160] ss:$16 sps:$4 sm:$0xff]   ;;  %v4815_v13 = vld [vmem:[#allocation5 + $0x168] ss:$16 sps:$4 sm:$0xff]  }
  0x4b   :  { %990 = vmatprep.subr.bf16.mxu1 %v4770_v39  ;;  %v4816_v14 = vld [vmem:[#allocation5 + $0x184] ss:$16 sps:$4 sm:$0xff]   ;;  %v4818_v15 = vld [vmem:[#allocation5 + $0x18c] ss:$16 sps:$4 sm:$0xff]   ;;  %v4820_v16 = vld [vmem:[#allocation5 + $0x180] ss:$16 sps:$4 sm:$0xff]  }
  0x4c   :  { %v4821_v17 = vld [vmem:[#allocation5 + $0x188] ss:$16 sps:$4 sm:$0xff]   ;;  %v4822_v18 = vld [vmem:[#allocation5 + $0x1a4] ss:$16 sps:$4 sm:$0xff]   ;;  %v4824_v19 = vld [vmem:[#allocation5 + $0x1ac] ss:$16 sps:$4 sm:$0xff]  }
  0x4d   :  { %905 = vmatpush1.bf16.msra.mxu0 %v4772_v40  ;;  %v4826_v20 = vld [vmem:[#allocation5 + $0x1a0] ss:$16 sps:$4 sm:$0xff]   ;;  %v4827_v21 = vld [vmem:[#allocation5 + $0x1a8] ss:$16 sps:$4 sm:$0xff]   ;;  %v4828_v22 = vld [vmem:[#allocation5 + $0x1c4] ss:$16 sps:$4 sm:$0xff]  }
  0x4e   :  { %991 = vmatpush1.bf16.msra.mxu1 %v4773_v41  ;;  %906 = vmatprep.subr.bf16.mxu0 %v4774_v42  ;;  %v4830_v23 = vld [vmem:[#allocation5 + $0x1cc] ss:$16 sps:$4 sm:$0xff]   ;;  %v4832_v24 = vld [vmem:[#allocation5 + $0x1c0] ss:$16 sps:$4 sm:$0xff]   ;;  %v4833_v25 = vld [vmem:[#allocation5 + $0x1c8] ss:$16 sps:$4 sm:$0xff]  }
  0x4f   :  { %992 = vmatprep.subr.bf16.mxu1 %v4776_v43  ;;  %v4834_v26 = vld [vmem:[#allocation5 + $0x1e4] ss:$16 sps:$4 sm:$0xff]   ;;  %v4836_v27 = vld [vmem:[#allocation5 + $0x1ec] ss:$16 sps:$4 sm:$0xff]   ;;  %v4838_v28 = vld [vmem:[#allocation5 + $0x1e0] ss:$16 sps:$4 sm:$0xff]  }
  0x50   :  { %v4839_v29 = vld [vmem:[#allocation5 + $0x1e8] ss:$16 sps:$4 sm:$0xff]   ;;  %v4842_v30 = vld [vmem:[#allocation5 + $0x204] ss:$16 sps:$4 sm:$0xff]   ;;  %v4845_v31 = vld [vmem:[#allocation5 + $0x20c] ss:$16 sps:$4 sm:$0xff]  }
  0x51   :  { %907 = vmatpush1.bf16.msra.mxu0 %v4778_v44  ;;  %v4840_v43 = vld [vmem:[#allocation5 + $0x200] ss:$16 sps:$4 sm:$0xff]   ;;  %v4843_v44 = vld [vmem:[#allocation5 + $0x208] ss:$16 sps:$4 sm:$0xff]  }
  0x52   :  { %993 = vmatpush1.bf16.msra.mxu1 %v4779_v45  ;;  %908 = vmatprep.subr.bf16.mxu0 %v4780_v46 }
  0x53   :  { %994 = vmatprep.subr.bf16.mxu1 %v4782_v47 }
  0x55   :  { %909 = vmatpush1.bf16.msra.mxu0 %v4784_v48 }
  0x56   :  { %995 = vmatpush1.bf16.msra.mxu1 %v4785_v49  ;;  %910 = vmatprep.subr.bf16.mxu0 %v4786_v50 }
  0x57   :  { %996 = vmatprep.subr.bf16.mxu1 %v4788_v51  ;;  %v4848_v51 = vld [vmem:[#allocation5 + $0x224] ss:$16 sps:$4 sm:$0xff]  }
  0x59   :  { %911 = vmatpush1.bf16.msra.mxu0 %v4790_v52  ;;  %v4851_v52 = vld [vmem:[#allocation5 + $0x22c] ss:$16 sps:$4 sm:$0xff]  }
  0x5a   :  { %997 = vmatpush1.bf16.msra.mxu1 %v4791_v53  ;;  %912 = vmatprep.subr.bf16.mxu0 %v4792_v54  ;;  %v4857_v54 = vld [vmem:[#allocation5 + $0x24c] ss:$16 sps:$4 sm:$0xff]  }
  0x5b   :  { %998 = vmatprep.subr.bf16.mxu1 %v4794_v55  ;;  %v4860_v55 = vld [vmem:[#allocation5 + $0x264] ss:$16 sps:$4 sm:$0xff]  }
  0x5d   :  { %913 = vmatpush1.bf16.msra.mxu0 %v4796_v56  ;;  %v4863_v56 = vld [vmem:[#allocation5 + $0x26c] ss:$16 sps:$4 sm:$0xff]  }
  0x5e   :  { %999 = vmatpush1.bf16.msra.mxu1 %v4797_v57  ;;  %914 = vmatprep.subr.bf16.mxu0 %v4798_v58  ;;  %v4861_v57 = vld [vmem:[#allocation5 + $0x268] ss:$16 sps:$4 sm:$0xff]   ;;  %v4866_v58 = vld [vmem:[#allocation5 + $0x284] ss:$16 sps:$4 sm:$0xff]  }
  0x5f   :  { %1000 = vmatprep.subr.bf16.mxu1 %v4800_v59  ;;  %v4869_v59 = vld [vmem:[#allocation5 + $0x28c] ss:$16 sps:$4 sm:$0xff]  }
  0x61   :  { %915 = vmatpush1.bf16.msra.mxu0 %v4802_v60  ;;  %v4864_v60 = vld [vmem:[#allocation5 + $0x280] ss:$16 sps:$4 sm:$0xff]  }
  0x62   :  { %1001 = vmatpush1.bf16.msra.mxu1 %v4803_v61  ;;  %916 = vmatprep.subr.bf16.mxu0 %v4804_v62  ;;  %v4867_v61 = vld [vmem:[#allocation5 + $0x288] ss:$16 sps:$4 sm:$0xff]   ;;  %v4872_v62 = vld [vmem:[#allocation5 + $0x2a4] ss:$16 sps:$4 sm:$0xff]  }
  0x63   :  { %1002 = vmatprep.subr.bf16.mxu1 %v4806_v63  ;;  %v4875_v63 = vld [vmem:[#allocation5 + $0x2ac] ss:$16 sps:$4 sm:$0xff]  }
  0x65   :  { %917 = vmatpush1.bf16.msra.mxu0 %v4808_v4  ;;  %v4870_v4 = vld [vmem:[#allocation5 + $0x2a0] ss:$16 sps:$4 sm:$0xff]  }
  0x66   :  { %1003 = vmatpush1.bf16.msra.mxu1 %v4809_v5  ;;  %918 = vmatprep.subr.bf16.mxu0 %v4810_v6  ;;  %v4873_v5 = vld [vmem:[#allocation5 + $0x2a8] ss:$16 sps:$4 sm:$0xff]   ;;  %v4878_v6 = vld [vmem:[#allocation5 + $0x2c4] ss:$16 sps:$4 sm:$0xff]  }
  0x67   :  { %1004 = vmatprep.subr.bf16.mxu1 %v4812_v11  ;;  %v4881_v11 = vld [vmem:[#allocation5 + $0x2cc] ss:$16 sps:$4 sm:$0xff]  }
  0x69   :  { %919 = vmatpush1.bf16.msra.mxu0 %v4814_v12  ;;  %v4876_v12 = vld [vmem:[#allocation5 + $0x2c0] ss:$16 sps:$4 sm:$0xff]  }
  0x6a   :  { %1005 = vmatpush1.bf16.msra.mxu1 %v4815_v13  ;;  %920 = vmatprep.subr.bf16.mxu0 %v4816_v14  ;;  %v4879_v13 = vld [vmem:[#allocation5 + $0x2c8] ss:$16 sps:$4 sm:$0xff]   ;;  %v4884_v14 = vld [vmem:[#allocation5 + $0x2e4] ss:$16 sps:$4 sm:$0xff]  }
  0x6b   :  { %1006 = vmatprep.subr.bf16.mxu1 %v4818_v15  ;;  %v4887_v15 = vld [vmem:[#allocation5 + $0x2ec] ss:$16 sps:$4 sm:$0xff]  }
  0x6d   :  { %921 = vmatpush1.bf16.msra.mxu0 %v4820_v16  ;;  %v4882_v16 = vld [vmem:[#allocation5 + $0x2e0] ss:$16 sps:$4 sm:$0xff]  }
  0x6e   :  { %1007 = vmatpush1.bf16.msra.mxu1 %v4821_v17  ;;  %922 = vmatprep.subr.bf16.mxu0 %v4822_v18  ;;  %v4885_v17 = vld [vmem:[#allocation5 + $0x2e8] ss:$16 sps:$4 sm:$0xff]   ;;  %v4890_v18 = vld [vmem:[#allocation5 + $0x304] ss:$16 sps:$4 sm:$0xff]  }
  0x6f   :  { %1008 = vmatprep.subr.bf16.mxu1 %v4824_v19  ;;  %v4893_v19 = vld [vmem:[#allocation5 + $0x30c] ss:$16 sps:$4 sm:$0xff]  }
  0x71   :  { %923 = vmatpush1.bf16.msra.mxu0 %v4826_v20  ;;  %v4888_v20 = vld [vmem:[#allocation5 + $0x300] ss:$16 sps:$4 sm:$0xff]  }
  0x72   :  { %1009 = vmatpush1.bf16.msra.mxu1 %v4827_v21  ;;  %924 = vmatprep.subr.bf16.mxu0 %v4828_v22  ;;  %v4891_v21 = vld [vmem:[#allocation5 + $0x308] ss:$16 sps:$4 sm:$0xff]   ;;  %v4896_v22 = vld [vmem:[#allocation5 + $0x324] ss:$16 sps:$4 sm:$0xff]  }
  0x73   :  { %1010 = vmatprep.subr.bf16.mxu1 %v4830_v23  ;;  %v4899_v23 = vld [vmem:[#allocation5 + $0x32c] ss:$16 sps:$4 sm:$0xff]  }
  0x75   :  { %925 = vmatpush1.bf16.msra.mxu0 %v4832_v24  ;;  %v4894_v24 = vld [vmem:[#allocation5 + $0x320] ss:$16 sps:$4 sm:$0xff]  }
  0x76   :  { %1011 = vmatpush1.bf16.msra.mxu1 %v4833_v25  ;;  %926 = vmatprep.subr.bf16.mxu0 %v4834_v26  ;;  %v4897_v25 = vld [vmem:[#allocation5 + $0x328] ss:$16 sps:$4 sm:$0xff]   ;;  %v4902_v26 = vld [vmem:[#allocation5 + $0x344] ss:$16 sps:$4 sm:$0xff]  }
  0x77   :  { %1012 = vmatprep.subr.bf16.mxu1 %v4836_v27  ;;  %v4905_v27 = vld [vmem:[#allocation5 + $0x34c] ss:$16 sps:$4 sm:$0xff]  }
  0x79   :  { %927 = vmatpush1.bf16.msra.mxu0 %v4838_v28  ;;  %v4900_v28 = vld [vmem:[#allocation5 + $0x340] ss:$16 sps:$4 sm:$0xff]  }
  0x7a   :  { %1013 = vmatpush1.bf16.msra.mxu1 %v4839_v29  ;;  %939 = vmatprep.subr.bf16.mxu0 %v4842_v30  ;;  %v4903_v29 = vld [vmem:[#allocation5 + $0x348] ss:$16 sps:$4 sm:$0xff]   ;;  %v4908_v30 = vld [vmem:[#allocation5 + $0x364] ss:$16 sps:$4 sm:$0xff]  }
  0x7b   :  { %1025 = vmatprep.subr.bf16.mxu1 %v4845_v31  ;;  %v4911_v31 = vld [vmem:[#allocation5 + $0x36c] ss:$16 sps:$4 sm:$0xff]  }
  0xce   :  { %v77_v32 = vpop.xlane.xlu0 %76 }
  0xcf   :  { %v84_v33 = vmul.f32 0.001953125, %v77_v32  ;;  %v4906_v32 = vld [vmem:[#allocation5 + $0x360] ss:$16 sps:$4 sm:$0xff]  }
  0xd1   :  { %v86_v34 = vadd.f32 1e-08, %v84_v33  ;;  %v4909_v33 = vld [vmem:[#allocation5 + $0x368] ss:$16 sps:$4 sm:$0xff]  }
  0xd2   :  { %v82_v35 = vpop.xlane.xlu0 %81 }
  0xd3   :  { %v85_v36 = vmul.f32 0.001953125, %v82_v35  ;;  %5512 = vrsqrt.f32 %v86_v34  ;;  %v4914_v34 = vld [vmem:[#allocation5 + $0x384] ss:$16 sps:$4 sm:$0xff]   ;;  %v4917_v35 = vld [vmem:[#allocation5 + $0x38c] ss:$16 sps:$4 sm:$0xff]  }
  0xd5   :  { %v87_v37 = vadd.f32 1e-08, %v85_v36  ;;  %v4912_v36 = vld [vmem:[#allocation5 + $0x380] ss:$16 sps:$4 sm:$0xff]  }
  0xd7   :  { %5514 = vrsqrt.f32 %v87_v37  ;;  %v4915_v37 = vld [vmem:[#allocation5 + $0x388] ss:$16 sps:$4 sm:$0xff]  }
  0xdd   :  { %v5513_v38 = vpop.eup %5512 }
  0xde   :  { %v91_v40 = vmul.f32 %v5513_v38, %v5681_v1  ;;  %v90_v41 = vmul.f32 %v5513_v38, %v5679_v0  ;;  %v92_v46 = vmul.f32 %v5513_v38, %v5683_v2  ;;  %v93_v0 = vmul.f32 %v5513_v38, %v5685_v3  ;;  %v4846_v1 = vld [vmem:[#allocation5 + $0x220] ss:$16 sps:$4 sm:$0xff]   ;;  %v4854_v2 = vld [vmem:[#allocation5 + $0x244] ss:$16 sps:$4 sm:$0xff]  }
  0xdf   :  { %v4858_v3 = vld [vmem:[#allocation5 + $0x260] ss:$16 sps:$4 sm:$0xff]   ;;  %v4920_v38 = vld [vmem:[#allocation5 + $0x3a4] ss:$16 sps:$4 sm:$0xff]  }
  0xe1   :  { %v5515_v39 = vpop.eup %5514 }
  0xe2   :  { %v95_v42 = vmul.f32 %v5515_v39, %v5695_v8  ;;  %v94_v45 = vmul.f32 %v5515_v39, %v5693_v7  ;;  %v96_v47 = vmul.f32 %v5515_v39, %v5697_v9  ;;  %v97_v48 = vmul.f32 %v5515_v39, %v5699_v10  ;;  %v4849_v8 = vld [vmem:[#allocation5 + $0x228] ss:$16 sps:$4 sm:$0xff]   ;;  %v4852_v9 = vld [vmem:[#allocation5 + $0x240] ss:$16 sps:$4 sm:$0xff]   ;;  %v4923_v39 = vld [vmem:[#allocation5 + $0x3ac] ss:$16 sps:$4 sm:$0xff]  }
  0xe3   :  { %v4855_v10 = vld [vmem:[#allocation5 + $0x248] ss:$16 sps:$4 sm:$0xff]  }
  0xe4   :  { %v99_v49 = vpack.c.bf16 %v95_v42, %v91_v40  ;;  %v98_v50 = vpack.c.bf16 %v94_v45, %v90_v41  ;;  %v5718_v53 = vpack.c.bf16 %v96_v47, %v92_v46  ;;  %v101_v7 = vpack.c.bf16 %v97_v48, %v93_v0  ;;  %v4918_v40 = vld [vmem:[#allocation5 + $0x3a0] ss:$16 sps:$4 sm:$0xff]   ;;  %v4921_v41 = vld [vmem:[#allocation5 + $0x3a8] ss:$16 sps:$4 sm:$0xff]   ;;  %v4926_v42 = vld [vmem:[#allocation5 + $0x3c4] ss:$16 sps:$4 sm:$0xff]  }
  0xe5   :  { %v4927_v45 = vld [vmem:[#allocation5 + $0x3c8] ss:$16 sps:$4 sm:$0xff]   ;;  %v4932_v46 = vld [vmem:[#allocation5 + $0x3e4] ss:$16 sps:$4 sm:$0xff]   ;;  %v4935_v47 = vld [vmem:[#allocation5 + $0x3ec] ss:$16 sps:$4 sm:$0xff]  }
  0xe6   :  { %928 = vmatprep.mubr.bf16.mxu0 %v99_v49  ;;  %1014 = vmatprep.mubr.bf16.mxu1 %v99_v49  ;;  %v4930_v48 = vld [vmem:[#allocation5 + $0x3e0] ss:$16 sps:$4 sm:$0xff]   ;;  %v4933_v49 = vld [vmem:[#allocation5 + $0x3e8] ss:$16 sps:$4 sm:$0xff]  }
  0xe7   :  { %929 = vmatmul.mubr.bf16.vlgmr.msra.gmra.mrb[0].mxu0 %v98_v50  ;;  %1015 = vmatmul.mubr.bf16.vlgmr.msra.gmra.mrb[0].mxu1 %v98_v50  ;;  %v4938_v50 = vld [vmem:[#allocation5 + $0x404] ss:$16 sps:$4 sm:$0xff]   ;;  %v4939_v0 = vld [vmem:[#allocation5 + $0x408] ss:$16 sps:$4 sm:$0xff]  }
  0xe8   :  { %940 = vmatpush1.bf16.msra.mxu0 %v4840_v43  ;;  %1026 = vmatpush1.bf16.msra.mxu1 %v4843_v44  ;;  %v4929_v43 = vld [vmem:[#allocation5 + $0x3cc] ss:$16 sps:$4 sm:$0xff]   ;;  %v4924_v44 = vld [vmem:[#allocation5 + $0x3c0] ss:$16 sps:$4 sm:$0xff]  }
  0xe9   :  { %971 = vmatprep.mubr.bf16.mxu0 %v101_v7  ;;  %1057 = vmatprep.mubr.bf16.mxu1 %v101_v7  ;;  %v4942_v7 = vld [vmem:[#allocation5 + $0x420] ss:$16 sps:$4 sm:$0xff]  }
  0xea   :  { %941 = vmatprep.subr.bf16.mxu0 %v4848_v51  ;;  %1027 = vmatprep.subr.bf16.mxu1 %v4851_v52  ;;  %v4941_v51 = vld [vmem:[#allocation5 + $0x40c] ss:$16 sps:$4 sm:$0xff]   ;;  %v4936_v52 = vld [vmem:[#allocation5 + $0x400] ss:$16 sps:$4 sm:$0xff]  }
  0xec   :  { %942 = vmatpush1.bf16.msra.mxu0 %v4846_v1  ;;  %1028 = vmatpush1.bf16.msra.mxu1 %v4849_v8  ;;  %v4944_v1 = vld [vmem:[#allocation5 + $0x424] ss:$16 sps:$4 sm:$0xff]   ;;  %v4947_v8 = vld [vmem:[#allocation5 + $0x42c] ss:$16 sps:$4 sm:$0xff]  }
  0xed   :  { %943 = vmatprep.subr.bf16.mxu0 %v4854_v2  ;;  %1029 = vmatprep.subr.bf16.mxu1 %v4857_v54  ;;  %v4945_v2 = vld [vmem:[#allocation5 + $0x428] ss:$16 sps:$4 sm:$0xff]   ;;  %v4950_v54 = vld [vmem:[#allocation5 + $0x444] ss:$16 sps:$4 sm:$0xff]  }
  0xf0   :  { %944 = vmatpush1.bf16.msra.mxu0 %v4852_v9  ;;  %1030 = vmatpush1.bf16.msra.mxu1 %v4855_v10  ;;  %v4953_v9 = vld [vmem:[#allocation5 + $0x44c] ss:$16 sps:$4 sm:$0xff]   ;;  %v4948_v10 = vld [vmem:[#allocation5 + $0x440] ss:$16 sps:$4 sm:$0xff]  }
  0xf1   :  { %945 = vmatprep.subr.bf16.mxu0 %v4860_v55  ;;  %1031 = vmatprep.subr.bf16.mxu1 %v4863_v56  ;;  %v4951_v55 = vld [vmem:[#allocation5 + $0x448] ss:$16 sps:$4 sm:$0xff]   ;;  %v4956_v56 = vld [vmem:[#allocation5 + $0x464] ss:$16 sps:$4 sm:$0xff]  }
  0xf4   :  { %946 = vmatpush1.bf16.msra.mxu0 %v4858_v3  ;;  %1032 = vmatpush1.bf16.msra.mxu1 %v4861_v57  ;;  %v4959_v3 = vld [vmem:[#allocation5 + $0x46c] ss:$16 sps:$4 sm:$0xff]   ;;  %v4954_v57 = vld [vmem:[#allocation5 + $0x460] ss:$16 sps:$4 sm:$0xff]  }
  0xf5   :  { %947 = vmatprep.subr.bf16.mxu0 %v4866_v58  ;;  %1033 = vmatprep.subr.bf16.mxu1 %v4869_v59  ;;  %v4962_v58 = vld [vmem:[#allocation5 + $0x484] ss:$16 sps:$4 sm:$0xff]   ;;  %v4965_v59 = vld [vmem:[#allocation5 + $0x48c] ss:$16 sps:$4 sm:$0xff]  }
  0xf8   :  { %948 = vmatpush1.bf16.msra.mxu0 %v4864_v60  ;;  %1034 = vmatpush1.bf16.msra.mxu1 %v4867_v61  ;;  %v4960_v60 = vld [vmem:[#allocation5 + $0x480] ss:$16 sps:$4 sm:$0xff]   ;;  %v4963_v61 = vld [vmem:[#allocation5 + $0x488] ss:$16 sps:$4 sm:$0xff]  }
  0xf9   :  { %949 = vmatprep.subr.bf16.mxu0 %v4872_v62  ;;  %1035 = vmatprep.subr.bf16.mxu1 %v4875_v63  ;;  %v4968_v62 = vld [vmem:[#allocation5 + $0x4a4] ss:$16 sps:$4 sm:$0xff]   ;;  %v4971_v63 = vld [vmem:[#allocation5 + $0x4ac] ss:$16 sps:$4 sm:$0xff]  }
  0xfc   :  { %950 = vmatpush1.bf16.msra.mxu0 %v4870_v4  ;;  %1036 = vmatpush1.bf16.msra.mxu1 %v4873_v5  ;;  %v4966_v4 = vld [vmem:[#allocation5 + $0x4a0] ss:$16 sps:$4 sm:$0xff]   ;;  %v4969_v5 = vld [vmem:[#allocation5 + $0x4a8] ss:$16 sps:$4 sm:$0xff]  }
  0xfd   :  { %951 = vmatprep.subr.bf16.mxu0 %v4878_v6  ;;  %1037 = vmatprep.subr.bf16.mxu1 %v4881_v11  ;;  %v4974_v6 = vld [vmem:[#allocation5 + $0x4c4] ss:$16 sps:$4 sm:$0xff]   ;;  %v4977_v11 = vld [vmem:[#allocation5 + $0x4cc] ss:$16 sps:$4 sm:$0xff]  }
 0x100   :  { %952 = vmatpush1.bf16.msra.mxu0 %v4876_v12  ;;  %1038 = vmatpush1.bf16.msra.mxu1 %v4879_v13  ;;  %v4972_v12 = vld [vmem:[#allocation5 + $0x4c0] ss:$16 sps:$4 sm:$0xff]   ;;  %v4975_v13 = vld [vmem:[#allocation5 + $0x4c8] ss:$16 sps:$4 sm:$0xff]  }
 0x101   :  { %953 = vmatprep.subr.bf16.mxu0 %v4884_v14  ;;  %1039 = vmatprep.subr.bf16.mxu1 %v4887_v15  ;;  %v4980_v14 = vld [vmem:[#allocation5 + $0x4e4] ss:$16 sps:$4 sm:$0xff]   ;;  %v4983_v15 = vld [vmem:[#allocation5 + $0x4ec] ss:$16 sps:$4 sm:$0xff]  }
 0x104   :  { %954 = vmatpush1.bf16.msra.mxu0 %v4882_v16  ;;  %1040 = vmatpush1.bf16.msra.mxu1 %v4885_v17  ;;  %v4978_v16 = vld [vmem:[#allocation5 + $0x4e0] ss:$16 sps:$4 sm:$0xff]   ;;  %v4981_v17 = vld [vmem:[#allocation5 + $0x4e8] ss:$16 sps:$4 sm:$0xff]  }
 0x105   :  { %955 = vmatprep.subr.bf16.mxu0 %v4890_v18  ;;  %1041 = vmatprep.subr.bf16.mxu1 %v4893_v19  ;;  %v4986_v18 = vld [vmem:[#allocation5 + $0x504] ss:$16 sps:$4 sm:$0xff]   ;;  %v4989_v19 = vld [vmem:[#allocation5 + $0x50c] ss:$16 sps:$4 sm:$0xff]  }
 0x108   :  { %956 = vmatpush1.bf16.msra.mxu0 %v4888_v20  ;;  %1042 = vmatpush1.bf16.msra.mxu1 %v4891_v21  ;;  %v4984_v20 = vld [vmem:[#allocation5 + $0x500] ss:$16 sps:$4 sm:$0xff]   ;;  %v4987_v21 = vld [vmem:[#allocation5 + $0x508] ss:$16 sps:$4 sm:$0xff]  }
 0x109   :  { %957 = vmatprep.subr.bf16.mxu0 %v4896_v22  ;;  %1043 = vmatprep.subr.bf16.mxu1 %v4899_v23  ;;  %v4992_v22 = vld [vmem:[#allocation5 + $0x524] ss:$16 sps:$4 sm:$0xff]   ;;  %v4995_v23 = vld [vmem:[#allocation5 + $0x52c] ss:$16 sps:$4 sm:$0xff]  }
 0x10c   :  { %958 = vmatpush1.bf16.msra.mxu0 %v4894_v24  ;;  %1044 = vmatpush1.bf16.msra.mxu1 %v4897_v25  ;;  %v4990_v24 = vld [vmem:[#allocation5 + $0x520] ss:$16 sps:$4 sm:$0xff]   ;;  %v4993_v25 = vld [vmem:[#allocation5 + $0x528] ss:$16 sps:$4 sm:$0xff]  }
 0x10d   :  { %959 = vmatprep.subr.bf16.mxu0 %v4902_v26  ;;  %1045 = vmatprep.subr.bf16.mxu1 %v4905_v27  ;;  %v4998_v26 = vld [vmem:[#allocation5 + $0x544] ss:$16 sps:$4 sm:$0xff]   ;;  %v5001_v27 = vld [vmem:[#allocation5 + $0x54c] ss:$16 sps:$4 sm:$0xff]  }
 0x110   :  { %960 = vmatpush1.bf16.msra.mxu0 %v4900_v28  ;;  %1046 = vmatpush1.bf16.msra.mxu1 %v4903_v29  ;;  %v4996_v28 = vld [vmem:[#allocation5 + $0x540] ss:$16 sps:$4 sm:$0xff]   ;;  %v4999_v29 = vld [vmem:[#allocation5 + $0x548] ss:$16 sps:$4 sm:$0xff]  }
 0x111   :  { %961 = vmatprep.subr.bf16.mxu0 %v4908_v30  ;;  %1047 = vmatprep.subr.bf16.mxu1 %v4911_v31  ;;  %v5004_v30 = vld [vmem:[#allocation5 + $0x564] ss:$16 sps:$4 sm:$0xff]   ;;  %v5007_v31 = vld [vmem:[#allocation5 + $0x56c] ss:$16 sps:$4 sm:$0xff]  }
 0x114   :  { %962 = vmatpush1.bf16.msra.mxu0 %v4906_v32  ;;  %1048 = vmatpush1.bf16.msra.mxu1 %v4909_v33  ;;  %v5002_v32 = vld [vmem:[#allocation5 + $0x560] ss:$16 sps:$4 sm:$0xff]   ;;  %v5005_v33 = vld [vmem:[#allocation5 + $0x568] ss:$16 sps:$4 sm:$0xff]  }
 0x115   :  { %963 = vmatprep.subr.bf16.mxu0 %v4914_v34  ;;  %1049 = vmatprep.subr.bf16.mxu1 %v4917_v35  ;;  %v5010_v34 = vld [vmem:[#allocation5 + $0x584] ss:$16 sps:$4 sm:$0xff]   ;;  %v5013_v35 = vld [vmem:[#allocation5 + $0x58c] ss:$16 sps:$4 sm:$0xff]  }
 0x118   :  { %964 = vmatpush1.bf16.msra.mxu0 %v4912_v36  ;;  %1050 = vmatpush1.bf16.msra.mxu1 %v4915_v37  ;;  %v5008_v36 = vld [vmem:[#allocation5 + $0x580] ss:$16 sps:$4 sm:$0xff]   ;;  %v5011_v37 = vld [vmem:[#allocation5 + $0x588] ss:$16 sps:$4 sm:$0xff]  }
 0x119   :  { %965 = vmatprep.subr.bf16.mxu0 %v4920_v38  ;;  %1051 = vmatprep.subr.bf16.mxu1 %v4923_v39  ;;  %v5016_v38 = vld [vmem:[#allocation5 + $0x5a4] ss:$16 sps:$4 sm:$0xff]   ;;  %v5019_v39 = vld [vmem:[#allocation5 + $0x5ac] ss:$16 sps:$4 sm:$0xff]  }
 0x11c   :  { %966 = vmatpush1.bf16.msra.mxu0 %v4918_v40  ;;  %1052 = vmatpush1.bf16.msra.mxu1 %v4921_v41  ;;  %v5014_v40 = vld [vmem:[#allocation5 + $0x5a0] ss:$16 sps:$4 sm:$0xff]   ;;  %v5017_v41 = vld [vmem:[#allocation5 + $0x5a8] ss:$16 sps:$4 sm:$0xff]  }
 0x11d   :  { %967 = vmatprep.subr.bf16.mxu0 %v4926_v42  ;;  %1053 = vmatprep.subr.bf16.mxu1 %v4929_v43  ;;  %v5022_v42 = vld [vmem:[#allocation5 + $0x5c4] ss:$16 sps:$4 sm:$0xff]   ;;  %v5025_v43 = vld [vmem:[#allocation5 + $0x5cc] ss:$16 sps:$4 sm:$0xff]  }
 0x120   :  { %968 = vmatpush1.bf16.msra.mxu0 %v4924_v44  ;;  %1054 = vmatpush1.bf16.msra.mxu1 %v4927_v45  ;;  %v5020_v44 = vld [vmem:[#allocation5 + $0x5c0] ss:$16 sps:$4 sm:$0xff]   ;;  %v5023_v45 = vld [vmem:[#allocation5 + $0x5c8] ss:$16 sps:$4 sm:$0xff]  }
 0x121   :  { %969 = vmatprep.subr.bf16.mxu0 %v4932_v46  ;;  %1055 = vmatprep.subr.bf16.mxu1 %v4935_v47  ;;  %v5028_v46 = vld [vmem:[#allocation5 + $0x5e4] ss:$16 sps:$4 sm:$0xff]   ;;  %v5031_v47 = vld [vmem:[#allocation5 + $0x5ec] ss:$16 sps:$4 sm:$0xff]  }
 0x124   :  { %970 = vmatpush1.bf16.msra.mxu0 %v4930_v48  ;;  %1056 = vmatpush1.bf16.msra.mxu1 %v4933_v49  ;;  %v5026_v48 = vld [vmem:[#allocation5 + $0x5e0] ss:$16 sps:$4 sm:$0xff]   ;;  %v5029_v49 = vld [vmem:[#allocation5 + $0x5e8] ss:$16 sps:$4 sm:$0xff]  }
 0x125   :  { %1908 = vmatprep.subr.bf16.mxu0 %v4938_v50  ;;  %1994 = vmatprep.subr.bf16.mxu1 %v4941_v51  ;;  %v5034_v50 = vld [vmem:[#allocation5 + $0x604] ss:$16 sps:$4 sm:$0xff]   ;;  %v5037_v51 = vld [vmem:[#allocation5 + $0x60c] ss:$16 sps:$4 sm:$0xff]  }
 0x127   :  { %972 = vmatmul.mubr.bf16.vlgmr.msra.gmra.mrb[0].mxu0 %v5718_v53  ;;  %1058 = vmatmul.mubr.bf16.vlgmr.msra.gmra.mrb[0].mxu1 %v5718_v53  ;;  %v4957_v53 = vld [vmem:[#allocation5 + $0x468] ss:$16 sps:$4 sm:$0xff]  }
 0x128   :  { %1909 = vmatpush1.bf16.msra.mxu0 %v4936_v52  ;;  %1995 = vmatpush1.bf16.msra.mxu1 %v4939_v0  ;;  %v232_v52 = vlaneseq }
 0x129   :  { %1910 = vmatprep.subr.bf16.mxu0 %v4944_v1  ;;  %1996 = vmatprep.subr.bf16.mxu1 %v4947_v8 }
 0x12a   :  { %v233_v0 = vshrl.u32 %v232_v52, 7  ;;  %v5067_v52 = vld [vmem:[#allocation5 + $0x6ac] ss:$16 sps:$4 sm:$0xff]  }
 0x12c   :  { %1911 = vmatpush1.bf16.msra.mxu0 %v4942_v7  ;;  %1997 = vmatpush1.bf16.msra.mxu1 %v4945_v2  ;;  %v5723_v1 = vsub.s32 0, %v233_v0  ;;  %v5725_v8 = vsub.s32 2, %v233_v0  ;;  %v230_v7 = vld [vmem:[#allocation7] sm:$0xf]  ;;  %v5727_v2 = vsub.s32 1, %v233_v0 }
 0x12d   :  { %1912 = vmatprep.subr.bf16.mxu0 %v4950_v54  ;;  %1998 = vmatprep.subr.bf16.mxu1 %v4953_v9  ;;  %v5729_v54 = vsub.s32 3, %v233_v0  ;;  %v5062_v0 = vld [vmem:[#allocation5 + $0x6a0] ss:$16 sps:$4 sm:$0xff]  }
 0x12e   :  { %v235_v9 = vrot.slane %v230_v7, %v5723_v1 }
 0x130   :  { %1913 = vmatpush1.bf16.msra.mxu0 %v4948_v10  ;;  %1999 = vmatpush1.bf16.msra.mxu1 %v4951_v55  ;;  %v243_v10 = vrot.slane %v230_v7, %v5725_v8  ;;  %v239_v55 = vrot.slane %v230_v7, %v5727_v2 }
 0x131   :  { %1914 = vmatprep.subr.bf16.mxu0 %v4956_v56  ;;  %2000 = vmatprep.subr.bf16.mxu1 %v4959_v3  ;;  %v247_v56 = vrot.slane %v230_v7, %v5729_v54  ;;  %v252_v3 = vpack.c.bf16 %v235_v9, %v235_v9  ;;  %v5065_v7 = vld [vmem:[#allocation5 + $0x6a8] ss:$16 sps:$4 sm:$0xff]   ;;  %v5070_v9 = vld [vmem:[#allocation5 + $0x6c4] ss:$16 sps:$4 sm:$0xff]  }
 0x134   :  { %1915 = vmatpush1.bf16.msra.mxu0 %v4954_v57  ;;  %2001 = vmatpush1.bf16.msra.mxu1 %v4957_v53  ;;  %v254_v57 = vpack.c.bf16 %v243_v10, %v243_v10  ;;  %v253_v53 = vpack.c.bf16 %v239_v55, %v239_v55  ;;  %v5073_v10 = vld [vmem:[#allocation5 + $0x6cc] ss:$16 sps:$4 sm:$0xff]   ;;  %v5068_v55 = vld [vmem:[#allocation5 + $0x6c0] ss:$16 sps:$4 sm:$0xff]  }
 0x135   :  { %1916 = vmatprep.subr.bf16.mxu0 %v4962_v58  ;;  %2002 = vmatprep.subr.bf16.mxu1 %v4965_v59  ;;  %v255_v58 = vpack.c.bf16 %v247_v56, %v247_v56  ;;  %v1073_v59 = vpack.i.b16 %v252_v3, %v252_v3  ;;  %v5071_v56 = vld [vmem:[#allocation5 + $0x6c8] ss:$16 sps:$4 sm:$0xff]   ;;  %v5076_v3 = vld [vmem:[#allocation5 + $0x6e4] ss:$16 sps:$4 sm:$0xff]  }
 0x138   :  { %1917 = vmatpush1.bf16.msra.mxu0 %v4960_v60  ;;  %2003 = vmatpush1.bf16.msra.mxu1 %v4963_v61  ;;  %v1087_v60 = vpack.i.b16 %v254_v57, %v254_v57  ;;  %v1080_v61 = vpack.i.b16 %v253_v53, %v253_v53  ;;  %v5079_v57 = vld [vmem:[#allocation5 + $0x6ec] ss:$16 sps:$4 sm:$0xff]   ;;  %v5074_v53 = vld [vmem:[#allocation5 + $0x6e0] ss:$16 sps:$4 sm:$0xff]  }
 0x139   :  { %1918 = vmatprep.subr.bf16.mxu0 %v4968_v62  ;;  %2004 = vmatprep.subr.bf16.mxu1 %v4971_v63  ;;  %v1094_v62 = vpack.i.b16 %v255_v58, %v255_v58  ;;  %v5077_v58 = vld [vmem:[#allocation5 + $0x6e8] ss:$16 sps:$4 sm:$0xff]  }
 0x13c   :  { %1919 = vmatpush1.bf16.msra.mxu0 %v4966_v4  ;;  %2005 = vmatpush1.bf16.msra.mxu1 %v4969_v5 }
 0x13d   :  { %1920 = vmatprep.subr.bf16.mxu0 %v4974_v6  ;;  %2006 = vmatprep.subr.bf16.mxu1 %v4977_v11  ;;  %v1078_v11 = vrot.slane %v1073_v59, %v5723_v1  ;;  %v5082_v59 = vld [vmem:[#allocation5 + $0x704] ss:$16 sps:$4 sm:$0xff]  }
 0x140   :  { %1921 = vmatpush1.bf16.msra.mxu0 %v4972_v12  ;;  %2007 = vmatpush1.bf16.msra.mxu1 %v4975_v13  ;;  %v1092_v12 = vrot.slane %v1087_v60, %v5723_v1  ;;  %v5085_v60 = vld [vmem:[#allocation5 + $0x70c] ss:$16 sps:$4 sm:$0xff]  }
 0x141   :  { %1922 = vmatprep.subr.bf16.mxu0 %v4980_v14  ;;  %2008 = vmatprep.subr.bf16.mxu1 %v4983_v15  ;;  %v1085_v15 = vrot.slane %v1080_v61, %v5723_v1  ;;  %v5080_v61 = vld [vmem:[#allocation5 + $0x700] ss:$16 sps:$4 sm:$0xff]  }
 0x144   :  { %1923 = vmatpush1.bf16.msra.mxu0 %v4978_v16  ;;  %2009 = vmatpush1.bf16.msra.mxu1 %v4981_v17  ;;  %v1099_v16 = vrot.slane %v1094_v62, %v5723_v1  ;;  %v5083_v62 = vld [vmem:[#allocation5 + $0x708] ss:$16 sps:$4 sm:$0xff]  }
 0x145   :  { %1924 = vmatprep.subr.bf16.mxu0 %v4986_v18  ;;  %2010 = vmatprep.subr.bf16.mxu1 %v4989_v19 }
 0x148   :  { %1925 = vmatpush1.bf16.msra.mxu0 %v4984_v20  ;;  %2011 = vmatpush1.bf16.msra.mxu1 %v4987_v21 }
 0x149   :  { %1926 = vmatprep.subr.bf16.mxu0 %v4992_v22  ;;  %2012 = vmatprep.subr.bf16.mxu1 %v4995_v23 }
 0x14c   :  { %1927 = vmatpush1.bf16.msra.mxu0 %v4990_v24  ;;  %2013 = vmatpush1.bf16.msra.mxu1 %v4993_v25 }
 0x14d   :  { %1928 = vmatprep.subr.bf16.mxu0 %v4998_v26  ;;  %2014 = vmatprep.subr.bf16.mxu1 %v5001_v27 }
 0x150   :  { %1929 = vmatpush1.bf16.msra.mxu0 %v4996_v28  ;;  %2015 = vmatpush1.bf16.msra.mxu1 %v4999_v29 }
 0x151   :  { %1930 = vmatprep.subr.bf16.mxu0 %v5004_v30  ;;  %2016 = vmatprep.subr.bf16.mxu1 %v5007_v31  ;;  %v5032_v31 = vld [vmem:[#allocation5 + $0x600] ss:$16 sps:$4 sm:$0xff]  }
 0x154   :  { %1931 = vmatpush1.bf16.msra.mxu0 %v5002_v32  ;;  %2017 = vmatpush1.bf16.msra.mxu1 %v5005_v33  ;;  %v5035_v32 = vld [vmem:[#allocation5 + $0x608] ss:$16 sps:$4 sm:$0xff]  }
 0x155   :  { %1932 = vmatprep.subr.bf16.mxu0 %v5010_v34  ;;  %2018 = vmatprep.subr.bf16.mxu1 %v5013_v35  ;;  %v5040_v34 = vld [vmem:[#allocation5 + $0x624] ss:$16 sps:$4 sm:$0xff]   ;;  %v5043_v35 = vld [vmem:[#allocation5 + $0x62c] ss:$16 sps:$4 sm:$0xff]  }
 0x158   :  { %1933 = vmatpush1.bf16.msra.mxu0 %v5008_v36  ;;  %2019 = vmatpush1.bf16.msra.mxu1 %v5011_v37  ;;  %v5038_v37 = vld [vmem:[#allocation5 + $0x620] ss:$16 sps:$4 sm:$0xff]  }
 0x159   :  { %1934 = vmatprep.subr.bf16.mxu0 %v5016_v38  ;;  %2020 = vmatprep.subr.bf16.mxu1 %v5019_v39  ;;  %v5041_v38 = vld [vmem:[#allocation5 + $0x628] ss:$16 sps:$4 sm:$0xff]   ;;  %v5046_v39 = vld [vmem:[#allocation5 + $0x644] ss:$16 sps:$4 sm:$0xff]  }
 0x15c   :  { %1935 = vmatpush1.bf16.msra.mxu0 %v5014_v40  ;;  %2021 = vmatpush1.bf16.msra.mxu1 %v5017_v41  ;;  %v5049_v40 = vld [vmem:[#allocation5 + $0x64c] ss:$16 sps:$4 sm:$0xff]   ;;  %v5044_v41 = vld [vmem:[#allocation5 + $0x640] ss:$16 sps:$4 sm:$0xff]  }
 0x15d   :  { %1936 = vmatprep.subr.bf16.mxu0 %v5022_v42  ;;  %2022 = vmatprep.subr.bf16.mxu1 %v5025_v43  ;;  %v5047_v42 = vld [vmem:[#allocation5 + $0x648] ss:$16 sps:$4 sm:$0xff]   ;;  %v5052_v43 = vld [vmem:[#allocation5 + $0x664] ss:$16 sps:$4 sm:$0xff]  }
 0x160   :  { %1937 = vmatpush1.bf16.msra.mxu0 %v5020_v44  ;;  %2023 = vmatpush1.bf16.msra.mxu1 %v5023_v45  ;;  %v5055_v44 = vld [vmem:[#allocation5 + $0x66c] ss:$16 sps:$4 sm:$0xff]   ;;  %v5050_v45 = vld [vmem:[#allocation5 + $0x660] ss:$16 sps:$4 sm:$0xff]  }
 0x161   :  { %1938 = vmatprep.subr.bf16.mxu0 %v5028_v46  ;;  %2024 = vmatprep.subr.bf16.mxu1 %v5031_v47  ;;  %v5053_v46 = vld [vmem:[#allocation5 + $0x668] ss:$16 sps:$4 sm:$0xff]   ;;  %v5058_v47 = vld [vmem:[#allocation5 + $0x684] ss:$16 sps:$4 sm:$0xff]  }
 0x164   :  { %1939 = vmatpush1.bf16.msra.mxu0 %v5026_v48  ;;  %2025 = vmatpush1.bf16.msra.mxu1 %v5029_v49  ;;  %v5061_v48 = vld [vmem:[#allocation5 + $0x68c] ss:$16 sps:$4 sm:$0xff]   ;;  %v5056_v49 = vld [vmem:[#allocation5 + $0x680] ss:$16 sps:$4 sm:$0xff]  }
 0x165   :  { %1951 = vmatprep.subr.bf16.mxu0 %v5034_v50  ;;  %2037 = vmatprep.subr.bf16.mxu1 %v5037_v51  ;;  %v5059_v50 = vld [vmem:[#allocation5 + $0x688] ss:$16 sps:$4 sm:$0xff]   ;;  %v5064_v51 = vld [vmem:[#allocation5 + $0x6a4] ss:$16 sps:$4 sm:$0xff]  }
 0x1fa   :  { %v973_v63 = vpop.f32.mrb[0].mxu0  ;;  %v1059_v4 = vpop.f32.mrb[0].mxu1 }
 0x1fb   :  { %v975_v5 = vpop.f32.mrb[1].mxu0  ;;  %v1061_v6 = vpop.f32.mrb[1].mxu1 }
 0x1fc   :  { %v977_v13 = vpop.f32.mrb[2].mxu0  ;;  %v1063_v14 = vpop.f32.mrb[2].mxu1 }
 0x1fd   :  { %v1068_v17 = vpack.c.bf16 %v977_v13, %v973_v63  ;;  %v1070_v18 = vpack.c.bf16 %v1063_v14, %v1059_v4  ;;  %v979_v19 = vpop.f32.mrb[3].mxu0  ;;  %v1065_v20 = vpop.f32.mrb[3].mxu1  ;;  %v5088_v63 = vld [vmem:[#allocation5 + $0x724] ss:$16 sps:$4 sm:$0xff]   ;;  %v5091_v4 = vld [vmem:[#allocation5 + $0x72c] ss:$16 sps:$4 sm:$0xff]  }
 0x1fe   :  { %v1069_v21 = vpack.c.bf16 %v979_v19, %v975_v5  ;;  %v1071_v22 = vpack.c.bf16 %v1065_v20, %v1061_v6  ;;  %v5086_v5 = vld [vmem:[#allocation5 + $0x720] ss:$16 sps:$4 sm:$0xff]   ;;  %v5089_v6 = vld [vmem:[#allocation5 + $0x728] ss:$16 sps:$4 sm:$0xff]   ;;  %v5106_v19 = vld [vmem:[#allocation5 + $0x784] ss:$16 sps:$4 sm:$0xff]  }
 0x1ff   :  { %v1100_v23 = vadd.bf16 %v1078_v11, %v1068_v17  ;;  %v5739_v24 = vadd.bf16 %v1092_v12, %v1070_v18  ;;  %v5094_v11 = vld [vmem:[#allocation5 + $0x744] ss:$16 sps:$4 sm:$0xff]   ;;  %v5097_v12 = vld [vmem:[#allocation5 + $0x74c] ss:$16 sps:$4 sm:$0xff]   ;;  %v5092_v13 = vld [vmem:[#allocation5 + $0x740] ss:$16 sps:$4 sm:$0xff]  }
 0x200   :  { %v1101_v25 = vadd.bf16 %v1085_v15, %v1069_v21  ;;  %v1103_v26 = vadd.bf16 %v1099_v16, %v1071_v22  ;;  %v5095_v14 = vld [vmem:[#allocation5 + $0x748] ss:$16 sps:$4 sm:$0xff]   ;;  %v5100_v15 = vld [vmem:[#allocation5 + $0x764] ss:$16 sps:$4 sm:$0xff]   ;;  %v5103_v16 = vld [vmem:[#allocation5 + $0x76c] ss:$16 sps:$4 sm:$0xff]  }
 0x201   :  { %v1104_v27 = vmul.bf16 1045249613, %v1100_v23  ;;  %v5098_v17 = vld [vmem:[#allocation5 + $0x760] ss:$16 sps:$4 sm:$0xff]   ;;  %v5101_v18 = vld [vmem:[#allocation5 + $0x768] ss:$16 sps:$4 sm:$0xff]  }
 0x202   :  { %v1105_v28 = vmul.bf16 1045249613, %v1101_v25  ;;  %v1107_v29 = vmul.bf16 1045249613, %v1103_v26  ;;  %v5109_v20 = vld [vmem:[#allocation5 + $0x78c] ss:$16 sps:$4 sm:$0xff]  }
 0x203   :  { %v1108_v33 = vmax.bf16 %v1104_v27, %v1100_v23  ;;  %v5104_v21 = vld [vmem:[#allocation5 + $0x780] ss:$16 sps:$4 sm:$0xff]   ;;  %v5107_v22 = vld [vmem:[#allocation5 + $0x788] ss:$16 sps:$4 sm:$0xff]   ;;  %v5112_v23 = vld [vmem:[#allocation5 + $0x7a4] ss:$16 sps:$4 sm:$0xff]  }
 0x204   :  { %v1109_v30 = vmax.bf16 %v1105_v28, %v1101_v25  ;;  %v1111_v36 = vmax.bf16 %v1107_v29, %v1103_v26  ;;  %v5115_v25 = vld [vmem:[#allocation5 + $0x7ac] ss:$16 sps:$4 sm:$0xff]   ;;  %v5110_v26 = vld [vmem:[#allocation5 + $0x7a0] ss:$16 sps:$4 sm:$0xff]   ;;  %v5113_v27 = vld [vmem:[#allocation5 + $0x7a8] ss:$16 sps:$4 sm:$0xff]  }
 0x205   :  { %v5118_v28 = vld [vmem:[#allocation5 + $0x7c4] ss:$16 sps:$4 sm:$0xff]   ;;  %v5121_v29 = vld [vmem:[#allocation5 + $0x7cc] ss:$16 sps:$4 sm:$0xff]  }
 0x206   :  { %1940 = vmatprep.mubr.bf16.mxu0 %v1109_v30  ;;  %2026 = vmatprep.mubr.bf16.mxu1 %v1109_v30  ;;  %v5116_v30 = vld [vmem:[#allocation5 + $0x7c0] ss:$16 sps:$4 sm:$0xff]  }
 0x207   :  { %1941 = vmatmul.mubr.bf16.vlgmr.msra.gmra.mrb[4].mxu0 %v1108_v33  ;;  %2027 = vmatmul.mubr.bf16.vlgmr.msra.gmra.mrb[4].mxu1 %v1108_v33  ;;  %v5127_v33 = vld [vmem:[#allocation5 + $0x7ec] ss:$16 sps:$4 sm:$0xff]  }
 0x208   :  { %1952 = vmatpush1.bf16.msra.mxu0 %v5032_v31  ;;  %2038 = vmatpush1.bf16.msra.mxu1 %v5035_v32  ;;  %v5119_v31 = vld [vmem:[#allocation5 + $0x7c8] ss:$16 sps:$4 sm:$0xff]   ;;  %v5124_v32 = vld [vmem:[#allocation5 + $0x7e4] ss:$16 sps:$4 sm:$0xff]  }
 0x209   :  { %1983 = vmatprep.mubr.bf16.mxu0 %v1111_v36  ;;  %2069 = vmatprep.mubr.bf16.mxu1 %v1111_v36  ;;  %v1106_v36 = vmul.bf16 1045249613, %v5739_v24 }
 0x20a   :  { %1953 = vmatprep.subr.bf16.mxu0 %v5040_v34  ;;  %2039 = vmatprep.subr.bf16.mxu1 %v5043_v35  ;;  %v5122_v34 = vld [vmem:[#allocation5 + $0x7e0] ss:$16 sps:$4 sm:$0xff]   ;;  %v5125_v35 = vld [vmem:[#allocation5 + $0x7e8] ss:$16 sps:$4 sm:$0xff]  }
 0x20c   :  { %1954 = vmatpush1.bf16.msra.mxu0 %v5038_v37  ;;  %2040 = vmatpush1.bf16.msra.mxu1 %v5041_v38  ;;  %v5130_v37 = vld [vmem:[#allocation5 + $0x804] ss:$16 sps:$4 sm:$0xff]   ;;  %v5133_v38 = vld [vmem:[#allocation5 + $0x80c] ss:$16 sps:$4 sm:$0xff]  }
 0x20d   :  { %1955 = vmatprep.subr.bf16.mxu0 %v5046_v39  ;;  %2041 = vmatprep.subr.bf16.mxu1 %v5049_v40  ;;  %v5128_v39 = vld [vmem:[#allocation5 + $0x800] ss:$16 sps:$4 sm:$0xff]   ;;  %v5131_v40 = vld [vmem:[#allocation5 + $0x808] ss:$16 sps:$4 sm:$0xff]  }
 0x210   :  { %1956 = vmatpush1.bf16.msra.mxu0 %v5044_v41  ;;  %2042 = vmatpush1.bf16.msra.mxu1 %v5047_v42  ;;  %v1110_v41 = vmax.bf16 %v1106_v36, %v5739_v24  ;;  %v5136_v42 = vld [vmem:[#allocation5 + $0x824] ss:$16 sps:$4 sm:$0xff]   ;;  %v5212_v36 = vld [vmem:[#allocation5 + $0x9c0] ss:$16 sps:$4 sm:$0xff]  }
 0x211   :  { %1957 = vmatprep.subr.bf16.mxu0 %v5052_v43  ;;  %2043 = vmatprep.subr.bf16.mxu1 %v5055_v44  ;;  %v5139_v43 = vld [vmem:[#allocation5 + $0x82c] ss:$16 sps:$4 sm:$0xff]   ;;  %v5134_v44 = vld [vmem:[#allocation5 + $0x820] ss:$16 sps:$4 sm:$0xff]   ;;  %v5148_v24 = vld [vmem:[#allocation5 + $0x864] ss:$16 sps:$4 sm:$0xff]  }
 0x214   :  { %1958 = vmatpush1.bf16.msra.mxu0 %v5050_v45  ;;  %2044 = vmatpush1.bf16.msra.mxu1 %v5053_v46  ;;  %v5137_v45 = vld [vmem:[#allocation5 + $0x828] ss:$16 sps:$4 sm:$0xff]   ;;  %v5142_v46 = vld [vmem:[#allocation5 + $0x844] ss:$16 sps:$4 sm:$0xff]  }
 0x215   :  { %1959 = vmatprep.subr.bf16.mxu0 %v5058_v47  ;;  %2045 = vmatprep.subr.bf16.mxu1 %v5061_v48  ;;  %v5145_v47 = vld [vmem:[#allocation5 + $0x84c] ss:$16 sps:$4 sm:$0xff]   ;;  %v5140_v48 = vld [vmem:[#allocation5 + $0x840] ss:$16 sps:$4 sm:$0xff]  }
 0x218   :  { %1960 = vmatpush1.bf16.msra.mxu0 %v5056_v49  ;;  %2046 = vmatpush1.bf16.msra.mxu1 %v5059_v50  ;;  %v5143_v49 = vld [vmem:[#allocation5 + $0x848] ss:$16 sps:$4 sm:$0xff]   ;;  %v5151_v50 = vld [vmem:[#allocation5 + $0x86c] ss:$16 sps:$4 sm:$0xff]  }
 0x219   :  { %1961 = vmatprep.subr.bf16.mxu0 %v5064_v51  ;;  %2047 = vmatprep.subr.bf16.mxu1 %v5067_v52  ;;  %v5146_v51 = vld [vmem:[#allocation5 + $0x860] ss:$16 sps:$4 sm:$0xff]   ;;  %v5149_v52 = vld [vmem:[#allocation5 + $0x868] ss:$16 sps:$4 sm:$0xff]  }
 0x21c   :  { %1962 = vmatpush1.bf16.msra.mxu0 %v5062_v0  ;;  %2048 = vmatpush1.bf16.msra.mxu1 %v5065_v7  ;;  %v5154_v0 = vld [vmem:[#allocation5 + $0x884] ss:$16 sps:$4 sm:$0xff]   ;;  %v5157_v7 = vld [vmem:[#allocation5 + $0x88c] ss:$16 sps:$4 sm:$0xff]  }
 0x21d   :  { %1963 = vmatprep.subr.bf16.mxu0 %v5070_v9  ;;  %2049 = vmatprep.subr.bf16.mxu1 %v5073_v10  ;;  %v5152_v9 = vld [vmem:[#allocation5 + $0x880] ss:$16 sps:$4 sm:$0xff]   ;;  %v5155_v10 = vld [vmem:[#allocation5 + $0x888] ss:$16 sps:$4 sm:$0xff]  }
 0x220   :  { %1964 = vmatpush1.bf16.msra.mxu0 %v5068_v55  ;;  %2050 = vmatpush1.bf16.msra.mxu1 %v5071_v56  ;;  %v5160_v55 = vld [vmem:[#allocation5 + $0x8a4] ss:$16 sps:$4 sm:$0xff]   ;;  %v5163_v56 = vld [vmem:[#allocation5 + $0x8ac] ss:$16 sps:$4 sm:$0xff]  }
 0x221   :  { %1965 = vmatprep.subr.bf16.mxu0 %v5076_v3  ;;  %2051 = vmatprep.subr.bf16.mxu1 %v5079_v57  ;;  %v5158_v3 = vld [vmem:[#allocation5 + $0x8a0] ss:$16 sps:$4 sm:$0xff]   ;;  %v5161_v57 = vld [vmem:[#allocation5 + $0x8a8] ss:$16 sps:$4 sm:$0xff]  }
 0x224   :  { %1966 = vmatpush1.bf16.msra.mxu0 %v5074_v53  ;;  %2052 = vmatpush1.bf16.msra.mxu1 %v5077_v58  ;;  %v5166_v53 = vld [vmem:[#allocation5 + $0x8c4] ss:$16 sps:$4 sm:$0xff]   ;;  %v5169_v58 = vld [vmem:[#allocation5 + $0x8cc] ss:$16 sps:$4 sm:$0xff]  }
 0x225   :  { %1967 = vmatprep.subr.bf16.mxu0 %v5082_v59  ;;  %2053 = vmatprep.subr.bf16.mxu1 %v5085_v60  ;;  %v5164_v59 = vld [vmem:[#allocation5 + $0x8c0] ss:$16 sps:$4 sm:$0xff]   ;;  %v5167_v60 = vld [vmem:[#allocation5 + $0x8c8] ss:$16 sps:$4 sm:$0xff]  }
 0x228   :  { %1968 = vmatpush1.bf16.msra.mxu0 %v5080_v61  ;;  %2054 = vmatpush1.bf16.msra.mxu1 %v5083_v62  ;;  %v5172_v61 = vld [vmem:[#allocation5 + $0x8e4] ss:$16 sps:$4 sm:$0xff]   ;;  %v5175_v62 = vld [vmem:[#allocation5 + $0x8ec] ss:$16 sps:$4 sm:$0xff]  }
 0x229   :  { %1969 = vmatprep.subr.bf16.mxu0 %v5088_v63  ;;  %2055 = vmatprep.subr.bf16.mxu1 %v5091_v4  ;;  %v5170_v63 = vld [vmem:[#allocation5 + $0x8e0] ss:$16 sps:$4 sm:$0xff]   ;;  %v5173_v4 = vld [vmem:[#allocation5 + $0x8e8] ss:$16 sps:$4 sm:$0xff]  }
 0x22c   :  { %1970 = vmatpush1.bf16.msra.mxu0 %v5086_v5  ;;  %2056 = vmatpush1.bf16.msra.mxu1 %v5089_v6  ;;  %v5178_v5 = vld [vmem:[#allocation5 + $0x904] ss:$16 sps:$4 sm:$0xff]   ;;  %v5181_v6 = vld [vmem:[#allocation5 + $0x90c] ss:$16 sps:$4 sm:$0xff]  }
 0x22d   :  { %1971 = vmatprep.subr.bf16.mxu0 %v5094_v11  ;;  %2057 = vmatprep.subr.bf16.mxu1 %v5097_v12  ;;  %v5176_v11 = vld [vmem:[#allocation5 + $0x900] ss:$16 sps:$4 sm:$0xff]   ;;  %v5179_v12 = vld [vmem:[#allocation5 + $0x908] ss:$16 sps:$4 sm:$0xff]  }
 0x230   :  { %1972 = vmatpush1.bf16.msra.mxu0 %v5092_v13  ;;  %2058 = vmatpush1.bf16.msra.mxu1 %v5095_v14  ;;  %v5184_v13 = vld [vmem:[#allocation5 + $0x924] ss:$16 sps:$4 sm:$0xff]   ;;  %v5187_v14 = vld [vmem:[#allocation5 + $0x92c] ss:$16 sps:$4 sm:$0xff]  }
 0x231   :  { %1973 = vmatprep.subr.bf16.mxu0 %v5100_v15  ;;  %2059 = vmatprep.subr.bf16.mxu1 %v5103_v16  ;;  %v5182_v15 = vld [vmem:[#allocation5 + $0x920] ss:$16 sps:$4 sm:$0xff]   ;;  %v5185_v16 = vld [vmem:[#allocation5 + $0x928] ss:$16 sps:$4 sm:$0xff]  }
 0x234   :  { %1974 = vmatpush1.bf16.msra.mxu0 %v5098_v17  ;;  %2060 = vmatpush1.bf16.msra.mxu1 %v5101_v18  ;;  %v5190_v17 = vld [vmem:[#allocation5 + $0x944] ss:$16 sps:$4 sm:$0xff]   ;;  %v5193_v18 = vld [vmem:[#allocation5 + $0x94c] ss:$16 sps:$4 sm:$0xff]  }
 0x235   :  { %1975 = vmatprep.subr.bf16.mxu0 %v5106_v19  ;;  %2061 = vmatprep.subr.bf16.mxu1 %v5109_v20  ;;  %v5188_v19 = vld [vmem:[#allocation5 + $0x940] ss:$16 sps:$4 sm:$0xff]   ;;  %v5191_v20 = vld [vmem:[#allocation5 + $0x948] ss:$16 sps:$4 sm:$0xff]  }
 0x238   :  { %1976 = vmatpush1.bf16.msra.mxu0 %v5104_v21  ;;  %2062 = vmatpush1.bf16.msra.mxu1 %v5107_v22  ;;  %v5196_v21 = vld [vmem:[#allocation5 + $0x964] ss:$16 sps:$4 sm:$0xff]   ;;  %v5199_v22 = vld [vmem:[#allocation5 + $0x96c] ss:$16 sps:$4 sm:$0xff]  }
 0x239   :  { %1977 = vmatprep.subr.bf16.mxu0 %v5112_v23  ;;  %2063 = vmatprep.subr.bf16.mxu1 %v5115_v25  ;;  %v5194_v23 = vld [vmem:[#allocation5 + $0x960] ss:$16 sps:$4 sm:$0xff]   ;;  %v5197_v25 = vld [vmem:[#allocation5 + $0x968] ss:$16 sps:$4 sm:$0xff]  }
 0x23c   :  { %1978 = vmatpush1.bf16.msra.mxu0 %v5110_v26  ;;  %2064 = vmatpush1.bf16.msra.mxu1 %v5113_v27  ;;  %v5202_v26 = vld [vmem:[#allocation5 + $0x984] ss:$16 sps:$4 sm:$0xff]   ;;  %v5205_v27 = vld [vmem:[#allocation5 + $0x98c] ss:$16 sps:$4 sm:$0xff]  }
 0x23d   :  { %1979 = vmatprep.subr.bf16.mxu0 %v5118_v28  ;;  %2065 = vmatprep.subr.bf16.mxu1 %v5121_v29  ;;  %v5200_v28 = vld [vmem:[#allocation5 + $0x980] ss:$16 sps:$4 sm:$0xff]   ;;  %v5203_v29 = vld [vmem:[#allocation5 + $0x988] ss:$16 sps:$4 sm:$0xff]  }
 0x240   :  { %1980 = vmatpush1.bf16.msra.mxu0 %v5116_v30  ;;  %2066 = vmatpush1.bf16.msra.mxu1 %v5119_v31  ;;  %v5208_v30 = vld [vmem:[#allocation5 + $0x9a4] ss:$16 sps:$4 sm:$0xff]   ;;  %v5211_v31 = vld [vmem:[#allocation5 + $0x9ac] ss:$16 sps:$4 sm:$0xff]  }
 0x241   :  { %1981 = vmatprep.subr.bf16.mxu0 %v5124_v32  ;;  %2067 = vmatprep.subr.bf16.mxu1 %v5127_v33  ;;  %v5206_v32 = vld [vmem:[#allocation5 + $0x9a0] ss:$16 sps:$4 sm:$0xff]   ;;  %v5209_v33 = vld [vmem:[#allocation5 + $0x9a8] ss:$16 sps:$4 sm:$0xff]  }
 0x244   :  { %1982 = vmatpush1.bf16.msra.mxu0 %v5122_v34  ;;  %2068 = vmatpush1.bf16.msra.mxu1 %v5125_v35  ;;  %v5214_v34 = vld [vmem:[#allocation5 + $0x9c4] ss:$16 sps:$4 sm:$0xff]   ;;  %v5217_v35 = vld [vmem:[#allocation5 + $0x9cc] ss:$16 sps:$4 sm:$0xff]  }
 0x245   :  { %2920 = vmatprep.subr.bf16.mxu0 %v5130_v37  ;;  %3006 = vmatprep.subr.bf16.mxu1 %v5133_v38  ;;  %v5215_v37 = vld [vmem:[#allocation5 + $0x9c8] ss:$16 sps:$4 sm:$0xff]   ;;  %v5220_v38 = vld [vmem:[#allocation5 + $0x9e4] ss:$16 sps:$4 sm:$0xff]  }
 0x247   :  { %1984 = vmatmul.mubr.bf16.vlgmr.msra.gmra.mrb[4].mxu0 %v1110_v41  ;;  %2070 = vmatmul.mubr.bf16.vlgmr.msra.gmra.mrb[4].mxu1 %v1110_v41  ;;  %v5221_v41 = vld [vmem:[#allocation5 + $0x9e8] ss:$16 sps:$4 sm:$0xff]  }
 0x248   :  { %2921 = vmatpush1.bf16.msra.mxu0 %v5128_v39  ;;  %3007 = vmatpush1.bf16.msra.mxu1 %v5131_v40  ;;  %v5223_v39 = vld [vmem:[#allocation5 + $0x9ec] ss:$16 sps:$4 sm:$0xff]   ;;  %v5218_v40 = vld [vmem:[#allocation5 + $0x9e0] ss:$16 sps:$4 sm:$0xff]  }
 0x249   :  { %2922 = vmatprep.subr.bf16.mxu0 %v5136_v42  ;;  %3008 = vmatprep.subr.bf16.mxu1 %v5139_v43  ;;  %v5226_v42 = vld [vmem:[#allocation5 + $0xa04] ss:$16 sps:$4 sm:$0xff]   ;;  %v5229_v43 = vld [vmem:[#allocation5 + $0xa0c] ss:$16 sps:$4 sm:$0xff]  }
 0x24c   :  { %2923 = vmatpush1.bf16.msra.mxu0 %v5134_v44  ;;  %3009 = vmatpush1.bf16.msra.mxu1 %v5137_v45  ;;  %v1242_v44 = vld [vmem:[#allocation7 + $0x4] sm:$0xf] }
 0x24d   :  { %2924 = vmatprep.subr.bf16.mxu0 %v5142_v46  ;;  %3010 = vmatprep.subr.bf16.mxu1 %v5145_v47  ;;  %v1247_v45 = vrot.slane %v1242_v44, %v5723_v1  ;;  %v1255_v46 = vrot.slane %v1242_v44, %v5725_v8  ;;  %v1251_v47 = vrot.slane %v1242_v44, %v5727_v2 }
 0x250   :  { %2925 = vmatpush1.bf16.msra.mxu0 %v5140_v48  ;;  %3011 = vmatpush1.bf16.msra.mxu1 %v5143_v49  ;;  %v1259_v48 = vrot.slane %v1242_v44, %v5729_v54  ;;  %v1264_v49 = vpack.c.bf16 %v1247_v45, %v1247_v45  ;;  %v5257_v44 = vld [vmem:[#allocation5 + $0xaa8] ss:$16 sps:$4 sm:$0xff]   ;;  %v5262_v45 = vld [vmem:[#allocation5 + $0xac4] ss:$16 sps:$4 sm:$0xff]  }
 0x251   :  { %2926 = vmatprep.subr.bf16.mxu0 %v5148_v24  ;;  %3012 = vmatprep.subr.bf16.mxu1 %v5151_v50  ;;  %v1266_v24 = vpack.c.bf16 %v1255_v46, %v1255_v46  ;;  %v1265_v50 = vpack.c.bf16 %v1251_v47, %v1251_v47  ;;  %v5265_v46 = vld [vmem:[#allocation5 + $0xacc] ss:$16 sps:$4 sm:$0xff]   ;;  %v5260_v47 = vld [vmem:[#allocation5 + $0xac0] ss:$16 sps:$4 sm:$0xff]  }
 0x254   :  { %2927 = vmatpush1.bf16.msra.mxu0 %v5146_v51  ;;  %3013 = vmatpush1.bf16.msra.mxu1 %v5149_v52  ;;  %v1267_v51 = vpack.c.bf16 %v1259_v48, %v1259_v48  ;;  %v2085_v52 = vpack.i.b16 %v1264_v49, %v1264_v49  ;;  %v5263_v48 = vld [vmem:[#allocation5 + $0xac8] ss:$16 sps:$4 sm:$0xff]   ;;  %v5268_v49 = vld [vmem:[#allocation5 + $0xae4] ss:$16 sps:$4 sm:$0xff]  }
 0x255   :  { %2928 = vmatprep.subr.bf16.mxu0 %v5154_v0  ;;  %3014 = vmatprep.subr.bf16.mxu1 %v5157_v7  ;;  %v2099_v0 = vpack.i.b16 %v1266_v24, %v1266_v24  ;;  %v2092_v7 = vpack.i.b16 %v1265_v50, %v1265_v50  ;;  %v5271_v24 = vld [vmem:[#allocation5 + $0xaec] ss:$16 sps:$4 sm:$0xff]   ;;  %v5266_v50 = vld [vmem:[#allocation5 + $0xae0] ss:$16 sps:$4 sm:$0xff]  }
 0x258   :  { %2929 = vmatpush1.bf16.msra.mxu0 %v5152_v9  ;;  %3015 = vmatpush1.bf16.msra.mxu1 %v5155_v10  ;;  %v2106_v9 = vpack.i.b16 %v1267_v51, %v1267_v51  ;;  %v5269_v51 = vld [vmem:[#allocation5 + $0xae8] ss:$16 sps:$4 sm:$0xff]  }
 0x259   :  { %2930 = vmatprep.subr.bf16.mxu0 %v5160_v55  ;;  %3016 = vmatprep.subr.bf16.mxu1 %v5163_v56 }
 0x25c   :  { %2931 = vmatpush1.bf16.msra.mxu0 %v5158_v3  ;;  %3017 = vmatpush1.bf16.msra.mxu1 %v5161_v57  ;;  %v2090_v57 = vrot.slane %v2085_v52, %v5723_v1  ;;  %v5274_v52 = vld [vmem:[#allocation5 + $0xb04] ss:$16 sps:$4 sm:$0xff]  }
 0x25d   :  { %2932 = vmatprep.subr.bf16.mxu0 %v5166_v53  ;;  %3018 = vmatprep.subr.bf16.mxu1 %v5169_v58  ;;  %v2104_v53 = vrot.slane %v2099_v0, %v5723_v1  ;;  %v5277_v0 = vld [vmem:[#allocation5 + $0xb0c] ss:$16 sps:$4 sm:$0xff]  }
 0x260   :  { %2933 = vmatpush1.bf16.msra.mxu0 %v5164_v59  ;;  %3019 = vmatpush1.bf16.msra.mxu1 %v5167_v60  ;;  %v2097_v60 = vrot.slane %v2092_v7, %v5723_v1  ;;  %v5272_v7 = vld [vmem:[#allocation5 + $0xb00] ss:$16 sps:$4 sm:$0xff]  }
 0x261   :  { %2934 = vmatprep.subr.bf16.mxu0 %v5172_v61  ;;  %3020 = vmatprep.subr.bf16.mxu1 %v5175_v62  ;;  %v2111_v61 = vrot.slane %v2106_v9, %v5723_v1  ;;  %v5275_v9 = vld [vmem:[#allocation5 + $0xb08] ss:$16 sps:$4 sm:$0xff]  }
 0x264   :  { %2935 = vmatpush1.bf16.msra.mxu0 %v5170_v63  ;;  %3021 = vmatpush1.bf16.msra.mxu1 %v5173_v4 }
 0x265   :  { %2936 = vmatprep.subr.bf16.mxu0 %v5178_v5  ;;  %3022 = vmatprep.subr.bf16.mxu1 %v5181_v6 }
 0x268   :  { %2937 = vmatpush1.bf16.msra.mxu0 %v5176_v11  ;;  %3023 = vmatpush1.bf16.msra.mxu1 %v5179_v12 }
 0x269   :  { %2938 = vmatprep.subr.bf16.mxu0 %v5184_v13  ;;  %3024 = vmatprep.subr.bf16.mxu1 %v5187_v14 }
 0x26c   :  { %2939 = vmatpush1.bf16.msra.mxu0 %v5182_v15  ;;  %3025 = vmatpush1.bf16.msra.mxu1 %v5185_v16 }
 0x26d   :  { %2940 = vmatprep.subr.bf16.mxu0 %v5190_v17  ;;  %3026 = vmatprep.subr.bf16.mxu1 %v5193_v18 }
 0x270   :  { %2941 = vmatpush1.bf16.msra.mxu0 %v5188_v19  ;;  %3027 = vmatpush1.bf16.msra.mxu1 %v5191_v20  ;;  %v5224_v20 = vld [vmem:[#allocation5 + $0xa00] ss:$16 sps:$4 sm:$0xff]  }
 0x271   :  { %2942 = vmatprep.subr.bf16.mxu0 %v5196_v21  ;;  %3028 = vmatprep.subr.bf16.mxu1 %v5199_v22  ;;  %v5227_v21 = vld [vmem:[#allocation5 + $0xa08] ss:$16 sps:$4 sm:$0xff]  }
 0x274   :  { %2943 = vmatpush1.bf16.msra.mxu0 %v5194_v23  ;;  %3029 = vmatpush1.bf16.msra.mxu1 %v5197_v25  ;;  %v5232_v23 = vld [vmem:[#allocation5 + $0xa24] ss:$16 sps:$4 sm:$0xff]   ;;  %v5235_v25 = vld [vmem:[#allocation5 + $0xa2c] ss:$16 sps:$4 sm:$0xff]  }
 0x275   :  { %2944 = vmatprep.subr.bf16.mxu0 %v5202_v26  ;;  %3030 = vmatprep.subr.bf16.mxu1 %v5205_v27  ;;  %v5230_v27 = vld [vmem:[#allocation5 + $0xa20] ss:$16 sps:$4 sm:$0xff]  }
 0x278   :  { %2945 = vmatpush1.bf16.msra.mxu0 %v5200_v28  ;;  %3031 = vmatpush1.bf16.msra.mxu1 %v5203_v29  ;;  %v5233_v28 = vld [vmem:[#allocation5 + $0xa28] ss:$16 sps:$4 sm:$0xff]   ;;  %v5238_v29 = vld [vmem:[#allocation5 + $0xa44] ss:$16 sps:$4 sm:$0xff]  }
 0x279   :  { %2946 = vmatprep.subr.bf16.mxu0 %v5208_v30  ;;  %3032 = vmatprep.subr.bf16.mxu1 %v5211_v31  ;;  %v5241_v30 = vld [vmem:[#allocation5 + $0xa4c] ss:$16 sps:$4 sm:$0xff]   ;;  %v5236_v31 = vld [vmem:[#allocation5 + $0xa40] ss:$16 sps:$4 sm:$0xff]  }
 0x27c   :  { %2947 = vmatpush1.bf16.msra.mxu0 %v5206_v32  ;;  %3033 = vmatpush1.bf16.msra.mxu1 %v5209_v33  ;;  %v5239_v32 = vld [vmem:[#allocation5 + $0xa48] ss:$16 sps:$4 sm:$0xff]   ;;  %v5244_v33 = vld [vmem:[#allocation5 + $0xa64] ss:$16 sps:$4 sm:$0xff]  }
 0x27d   :  { %2948 = vmatprep.subr.bf16.mxu0 %v5214_v34  ;;  %3034 = vmatprep.subr.bf16.mxu1 %v5217_v35  ;;  %v5247_v34 = vld [vmem:[#allocation5 + $0xa6c] ss:$16 sps:$4 sm:$0xff]   ;;  %v5242_v35 = vld [vmem:[#allocation5 + $0xa60] ss:$16 sps:$4 sm:$0xff]  }
 0x280   :  { %2949 = vmatpush1.bf16.msra.mxu0 %v5212_v36  ;;  %3035 = vmatpush1.bf16.msra.mxu1 %v5215_v37  ;;  %v5245_v36 = vld [vmem:[#allocation5 + $0xa68] ss:$16 sps:$4 sm:$0xff]   ;;  %v5250_v37 = vld [vmem:[#allocation5 + $0xa84] ss:$16 sps:$4 sm:$0xff]  }
 0x281   :  { %2950 = vmatprep.subr.bf16.mxu0 %v5220_v38  ;;  %3036 = vmatprep.subr.bf16.mxu1 %v5223_v39  ;;  %v5253_v38 = vld [vmem:[#allocation5 + $0xa8c] ss:$16 sps:$4 sm:$0xff]   ;;  %v5248_v39 = vld [vmem:[#allocation5 + $0xa80] ss:$16 sps:$4 sm:$0xff]  }
 0x284   :  { %2951 = vmatpush1.bf16.msra.mxu0 %v5218_v40  ;;  %3037 = vmatpush1.bf16.msra.mxu1 %v5221_v41  ;;  %v5251_v40 = vld [vmem:[#allocation5 + $0xa88] ss:$16 sps:$4 sm:$0xff]   ;;  %v5256_v41 = vld [vmem:[#allocation5 + $0xaa4] ss:$16 sps:$4 sm:$0xff]  }
 0x285   :  { %2963 = vmatprep.subr.bf16.mxu0 %v5226_v42  ;;  %3049 = vmatprep.subr.bf16.mxu1 %v5229_v43  ;;  %v5259_v42 = vld [vmem:[#allocation5 + $0xaac] ss:$16 sps:$4 sm:$0xff]   ;;  %v5254_v43 = vld [vmem:[#allocation5 + $0xaa0] ss:$16 sps:$4 sm:$0xff]  }
 0x31a   :  { %v1985_v10 = vpop.f32.mrb[4].mxu0  ;;  %v2071_v55 = vpop.f32.mrb[4].mxu1 }
 0x31b   :  { %v1987_v56 = vpop.f32.mrb[5].mxu0  ;;  %v2073_v3 = vpop.f32.mrb[5].mxu1 }
 0x31c   :  { %v1989_v58 = vpop.f32.mrb[6].mxu0  ;;  %v2075_v59 = vpop.f32.mrb[6].mxu1 }
 0x31d   :  { %v2080_v62 = vpack.c.bf16 %v1989_v58, %v1985_v10  ;;  %v2082_v63 = vpack.c.bf16 %v2075_v59, %v2071_v55  ;;  %v1991_v4 = vpop.f32.mrb[7].mxu0  ;;  %v2077_v5 = vpop.f32.mrb[7].mxu1  ;;  %v5280_v10 = vld [vmem:[#allocation5 + $0xb24] ss:$16 sps:$4 sm:$0xff]   ;;  %v5283_v55 = vld [vmem:[#allocation5 + $0xb2c] ss:$16 sps:$4 sm:$0xff]  }
 0x31e   :  { %v2081_v6 = vpack.c.bf16 %v1991_v4, %v1987_v56  ;;  %v2083_v11 = vpack.c.bf16 %v2077_v5, %v2073_v3  ;;  %v5278_v56 = vld [vmem:[#allocation5 + $0xb20] ss:$16 sps:$4 sm:$0xff]   ;;  %v5281_v3 = vld [vmem:[#allocation5 + $0xb28] ss:$16 sps:$4 sm:$0xff]   ;;  %v5298_v4 = vld [vmem:[#allocation5 + $0xb84] ss:$16 sps:$4 sm:$0xff]  }
 0x31f   :  { %v2112_v12 = vadd.bf16 %v2090_v57, %v2080_v62  ;;  %v5751_v13 = vadd.bf16 %v2104_v53, %v2082_v63  ;;  %v5286_v57 = vld [vmem:[#allocation5 + $0xb44] ss:$16 sps:$4 sm:$0xff]   ;;  %v5289_v53 = vld [vmem:[#allocation5 + $0xb4c] ss:$16 sps:$4 sm:$0xff]   ;;  %v5284_v58 = vld [vmem:[#allocation5 + $0xb40] ss:$16 sps:$4 sm:$0xff]  }
 0x320   :  { %v2113_v14 = vadd.bf16 %v2097_v60, %v2081_v6  ;;  %v2115_v15 = vadd.bf16 %v2111_v61, %v2083_v11  ;;  %v5287_v59 = vld [vmem:[#allocation5 + $0xb48] ss:$16 sps:$4 sm:$0xff]   ;;  %v5292_v60 = vld [vmem:[#allocation5 + $0xb64] ss:$16 sps:$4 sm:$0xff]   ;;  %v5295_v61 = vld [vmem:[#allocation5 + $0xb6c] ss:$16 sps:$4 sm:$0xff]  }
 0x321   :  { %v2116_v16 = vmul.bf16 1045249613, %v2112_v12  ;;  %v5290_v62 = vld [vmem:[#allocation5 + $0xb60] ss:$16 sps:$4 sm:$0xff]   ;;  %v5293_v63 = vld [vmem:[#allocation5 + $0xb68] ss:$16 sps:$4 sm:$0xff]  }
 0x322   :  { %v2117_v17 = vmul.bf16 1045249613, %v2113_v14  ;;  %v2119_v18 = vmul.bf16 1045249613, %v2115_v15  ;;  %v5301_v5 = vld [vmem:[#allocation5 + $0xb8c] ss:$16 sps:$4 sm:$0xff]  }
 0x323   :  { %v2120_v22 = vmax.bf16 %v2116_v16, %v2112_v12  ;;  %v5296_v6 = vld [vmem:[#allocation5 + $0xb80] ss:$16 sps:$4 sm:$0xff]   ;;  %v5299_v11 = vld [vmem:[#allocation5 + $0xb88] ss:$16 sps:$4 sm:$0xff]   ;;  %v5304_v12 = vld [vmem:[#allocation5 + $0xba4] ss:$16 sps:$4 sm:$0xff]  }
 0x324   :  { %v2121_v19 = vmax.bf16 %v2117_v17, %v2113_v14  ;;  %v2123_v26 = vmax.bf16 %v2119_v18, %v2115_v15  ;;  %v5307_v14 = vld [vmem:[#allocation5 + $0xbac] ss:$16 sps:$4 sm:$0xff]   ;;  %v5302_v15 = vld [vmem:[#allocation5 + $0xba0] ss:$16 sps:$4 sm:$0xff]   ;;  %v5305_v16 = vld [vmem:[#allocation5 + $0xba8] ss:$16 sps:$4 sm:$0xff]  }
 0x325   :  { %v5310_v17 = vld [vmem:[#allocation5 + $0xbc4] ss:$16 sps:$4 sm:$0xff]   ;;  %v5313_v18 = vld [vmem:[#allocation5 + $0xbcc] ss:$16 sps:$4 sm:$0xff]  }
 0x326   :  { %2952 = vmatprep.mubr.bf16.mxu0 %v2121_v19  ;;  %3038 = vmatprep.mubr.bf16.mxu1 %v2121_v19  ;;  %v5308_v19 = vld [vmem:[#allocation5 + $0xbc0] ss:$16 sps:$4 sm:$0xff]  }
 0x327   :  { %2953 = vmatmul.mubr.bf16.vlgmr.msra.gmra.mrb[8].mxu0 %v2120_v22  ;;  %3039 = vmatmul.mubr.bf16.vlgmr.msra.gmra.mrb[8].mxu1 %v2120_v22  ;;  %v5319_v22 = vld [vmem:[#allocation5 + $0xbec] ss:$16 sps:$4 sm:$0xff]  }
 0x328   :  { %2964 = vmatpush1.bf16.msra.mxu0 %v5224_v20  ;;  %3050 = vmatpush1.bf16.msra.mxu1 %v5227_v21  ;;  %v5311_v20 = vld [vmem:[#allocation5 + $0xbc8] ss:$16 sps:$4 sm:$0xff]   ;;  %v5316_v21 = vld [vmem:[#allocation5 + $0xbe4] ss:$16 sps:$4 sm:$0xff]  }
 0x329   :  { %2995 = vmatprep.mubr.bf16.mxu0 %v2123_v26  ;;  %3081 = vmatprep.mubr.bf16.mxu1 %v2123_v26  ;;  %v2118_v26 = vmul.bf16 1045249613, %v5751_v13 }
 0x32a   :  { %2965 = vmatprep.subr.bf16.mxu0 %v5232_v23  ;;  %3051 = vmatprep.subr.bf16.mxu1 %v5235_v25  ;;  %v5314_v23 = vld [vmem:[#allocation5 + $0xbe0] ss:$16 sps:$4 sm:$0xff]   ;;  %v5317_v25 = vld [vmem:[#allocation5 + $0xbe8] ss:$16 sps:$4 sm:$0xff]  }
 0x32c   :  { %2966 = vmatpush1.bf16.msra.mxu0 %v5230_v27  ;;  %3052 = vmatpush1.bf16.msra.mxu1 %v5233_v28  ;;  %v5322_v27 = vld [vmem:[#allocation5 + $0xc04] ss:$16 sps:$4 sm:$0xff]   ;;  %v5325_v28 = vld [vmem:[#allocation5 + $0xc0c] ss:$16 sps:$4 sm:$0xff]  }
 0x32d   :  { %2967 = vmatprep.subr.bf16.mxu0 %v5238_v29  ;;  %3053 = vmatprep.subr.bf16.mxu1 %v5241_v30  ;;  %v5320_v29 = vld [vmem:[#allocation5 + $0xc00] ss:$16 sps:$4 sm:$0xff]   ;;  %v5323_v30 = vld [vmem:[#allocation5 + $0xc08] ss:$16 sps:$4 sm:$0xff]  }
 0x330   :  { %2968 = vmatpush1.bf16.msra.mxu0 %v5236_v31  ;;  %3054 = vmatpush1.bf16.msra.mxu1 %v5239_v32  ;;  %v2122_v31 = vmax.bf16 %v2118_v26, %v5751_v13  ;;  %v5328_v32 = vld [vmem:[#allocation5 + $0xc24] ss:$16 sps:$4 sm:$0xff]   ;;  %v5404_v26 = vld [vmem:[#allocation5 + $0xdc0] ss:$16 sps:$4 sm:$0xff]  }
 0x331   :  { %2969 = vmatprep.subr.bf16.mxu0 %v5244_v33  ;;  %3055 = vmatprep.subr.bf16.mxu1 %v5247_v34  ;;  %v5331_v33 = vld [vmem:[#allocation5 + $0xc2c] ss:$16 sps:$4 sm:$0xff]   ;;  %v5326_v34 = vld [vmem:[#allocation5 + $0xc20] ss:$16 sps:$4 sm:$0xff]   ;;  %v5340_v13 = vld [vmem:[#allocation5 + $0xc64] ss:$16 sps:$4 sm:$0xff]  }
 0x334   :  { %2970 = vmatpush1.bf16.msra.mxu0 %v5242_v35  ;;  %3056 = vmatpush1.bf16.msra.mxu1 %v5245_v36  ;;  %v5329_v35 = vld [vmem:[#allocation5 + $0xc28] ss:$16 sps:$4 sm:$0xff]   ;;  %v5334_v36 = vld [vmem:[#allocation5 + $0xc44] ss:$16 sps:$4 sm:$0xff]  }
 0x335   :  { %2971 = vmatprep.subr.bf16.mxu0 %v5250_v37  ;;  %3057 = vmatprep.subr.bf16.mxu1 %v5253_v38  ;;  %v5337_v37 = vld [vmem:[#allocation5 + $0xc4c] ss:$16 sps:$4 sm:$0xff]   ;;  %v5332_v38 = vld [vmem:[#allocation5 + $0xc40] ss:$16 sps:$4 sm:$0xff]  }
 0x338   :  { %2972 = vmatpush1.bf16.msra.mxu0 %v5248_v39  ;;  %3058 = vmatpush1.bf16.msra.mxu1 %v5251_v40  ;;  %v5335_v39 = vld [vmem:[#allocation5 + $0xc48] ss:$16 sps:$4 sm:$0xff]   ;;  %v5343_v40 = vld [vmem:[#allocation5 + $0xc6c] ss:$16 sps:$4 sm:$0xff]  }
 0x339   :  { %2973 = vmatprep.subr.bf16.mxu0 %v5256_v41  ;;  %3059 = vmatprep.subr.bf16.mxu1 %v5259_v42  ;;  %v5338_v41 = vld [vmem:[#allocation5 + $0xc60] ss:$16 sps:$4 sm:$0xff]   ;;  %v5341_v42 = vld [vmem:[#allocation5 + $0xc68] ss:$16 sps:$4 sm:$0xff]  }
 0x33c   :  { %2974 = vmatpush1.bf16.msra.mxu0 %v5254_v43  ;;  %3060 = vmatpush1.bf16.msra.mxu1 %v5257_v44  ;;  %v5346_v43 = vld [vmem:[#allocation5 + $0xc84] ss:$16 sps:$4 sm:$0xff]   ;;  %v5349_v44 = vld [vmem:[#allocation5 + $0xc8c] ss:$16 sps:$4 sm:$0xff]  }
 0x33d   :  { %2975 = vmatprep.subr.bf16.mxu0 %v5262_v45  ;;  %3061 = vmatprep.subr.bf16.mxu1 %v5265_v46  ;;  %v5344_v45 = vld [vmem:[#allocation5 + $0xc80] ss:$16 sps:$4 sm:$0xff]   ;;  %v5347_v46 = vld [vmem:[#allocation5 + $0xc88] ss:$16 sps:$4 sm:$0xff]  }
 0x340   :  { %2976 = vmatpush1.bf16.msra.mxu0 %v5260_v47  ;;  %3062 = vmatpush1.bf16.msra.mxu1 %v5263_v48  ;;  %v5352_v47 = vld [vmem:[#allocation5 + $0xca4] ss:$16 sps:$4 sm:$0xff]   ;;  %v5355_v48 = vld [vmem:[#allocation5 + $0xcac] ss:$16 sps:$4 sm:$0xff]  }
 0x341   :  { %2977 = vmatprep.subr.bf16.mxu0 %v5268_v49  ;;  %3063 = vmatprep.subr.bf16.mxu1 %v5271_v24  ;;  %v5350_v49 = vld [vmem:[#allocation5 + $0xca0] ss:$16 sps:$4 sm:$0xff]   ;;  %v5353_v24 = vld [vmem:[#allocation5 + $0xca8] ss:$16 sps:$4 sm:$0xff]  }
 0x344   :  { %2978 = vmatpush1.bf16.msra.mxu0 %v5266_v50  ;;  %3064 = vmatpush1.bf16.msra.mxu1 %v5269_v51  ;;  %v5358_v50 = vld [vmem:[#allocation5 + $0xcc4] ss:$16 sps:$4 sm:$0xff]   ;;  %v5361_v51 = vld [vmem:[#allocation5 + $0xccc] ss:$16 sps:$4 sm:$0xff]  }
 0x345   :  { %2979 = vmatprep.subr.bf16.mxu0 %v5274_v52  ;;  %3065 = vmatprep.subr.bf16.mxu1 %v5277_v0  ;;  %v5356_v52 = vld [vmem:[#allocation5 + $0xcc0] ss:$16 sps:$4 sm:$0xff]   ;;  %v5359_v0 = vld [vmem:[#allocation5 + $0xcc8] ss:$16 sps:$4 sm:$0xff]  }
 0x348   :  { %2980 = vmatpush1.bf16.msra.mxu0 %v5272_v7  ;;  %3066 = vmatpush1.bf16.msra.mxu1 %v5275_v9  ;;  %v5364_v7 = vld [vmem:[#allocation5 + $0xce4] ss:$16 sps:$4 sm:$0xff]   ;;  %v5367_v9 = vld [vmem:[#allocation5 + $0xcec] ss:$16 sps:$4 sm:$0xff]  }
 0x349   :  { %2981 = vmatprep.subr.bf16.mxu0 %v5280_v10  ;;  %3067 = vmatprep.subr.bf16.mxu1 %v5283_v55  ;;  %v5362_v10 = vld [vmem:[#allocation5 + $0xce0] ss:$16 sps:$4 sm:$0xff]   ;;  %v5365_v55 = vld [vmem:[#allocation5 + $0xce8] ss:$16 sps:$4 sm:$0xff]  }
 0x34c   :  { %2982 = vmatpush1.bf16.msra.mxu0 %v5278_v56  ;;  %3068 = vmatpush1.bf16.msra.mxu1 %v5281_v3  ;;  %v5370_v56 = vld [vmem:[#allocation5 + $0xd04] ss:$16 sps:$4 sm:$0xff]   ;;  %v5373_v3 = vld [vmem:[#allocation5 + $0xd0c] ss:$16 sps:$4 sm:$0xff]  }
 0x34d   :  { %2983 = vmatprep.subr.bf16.mxu0 %v5286_v57  ;;  %3069 = vmatprep.subr.bf16.mxu1 %v5289_v53  ;;  %v5368_v57 = vld [vmem:[#allocation5 + $0xd00] ss:$16 sps:$4 sm:$0xff]   ;;  %v5371_v53 = vld [vmem:[#allocation5 + $0xd08] ss:$16 sps:$4 sm:$0xff]  }
 0x350   :  { %2984 = vmatpush1.bf16.msra.mxu0 %v5284_v58  ;;  %3070 = vmatpush1.bf16.msra.mxu1 %v5287_v59  ;;  %v5376_v58 = vld [vmem:[#allocation5 + $0xd24] ss:$16 sps:$4 sm:$0xff]   ;;  %v5379_v59 = vld [vmem:[#allocation5 + $0xd2c] ss:$16 sps:$4 sm:$0xff]  }
 0x351   :  { %2985 = vmatprep.subr.bf16.mxu0 %v5292_v60  ;;  %3071 = vmatprep.subr.bf16.mxu1 %v5295_v61  ;;  %v5374_v60 = vld [vmem:[#allocation5 + $0xd20] ss:$16 sps:$4 sm:$0xff]   ;;  %v5377_v61 = vld [vmem:[#allocation5 + $0xd28] ss:$16 sps:$4 sm:$0xff]  }
 0x354   :  { %2986 = vmatpush1.bf16.msra.mxu0 %v5290_v62  ;;  %3072 = vmatpush1.bf16.msra.mxu1 %v5293_v63  ;;  %v5382_v62 = vld [vmem:[#allocation5 + $0xd44] ss:$16 sps:$4 sm:$0xff]   ;;  %v5385_v63 = vld [vmem:[#allocation5 + $0xd4c] ss:$16 sps:$4 sm:$0xff]  }
 0x355   :  { %2987 = vmatprep.subr.bf16.mxu0 %v5298_v4  ;;  %3073 = vmatprep.subr.bf16.mxu1 %v5301_v5  ;;  %v5380_v4 = vld [vmem:[#allocation5 + $0xd40] ss:$16 sps:$4 sm:$0xff]   ;;  %v5383_v5 = vld [vmem:[#allocation5 + $0xd48] ss:$16 sps:$4 sm:$0xff]  }
 0x358   :  { %2988 = vmatpush1.bf16.msra.mxu0 %v5296_v6  ;;  %3074 = vmatpush1.bf16.msra.mxu1 %v5299_v11  ;;  %v5388_v6 = vld [vmem:[#allocation5 + $0xd64] ss:$16 sps:$4 sm:$0xff]   ;;  %v5391_v11 = vld [vmem:[#allocation5 + $0xd6c] ss:$16 sps:$4 sm:$0xff]  }
 0x359   :  { %2989 = vmatprep.subr.bf16.mxu0 %v5304_v12  ;;  %3075 = vmatprep.subr.bf16.mxu1 %v5307_v14  ;;  %v5386_v12 = vld [vmem:[#allocation5 + $0xd60] ss:$16 sps:$4 sm:$0xff]   ;;  %v5389_v14 = vld [vmem:[#allocation5 + $0xd68] ss:$16 sps:$4 sm:$0xff]  }
 0x35c   :  { %2990 = vmatpush1.bf16.msra.mxu0 %v5302_v15  ;;  %3076 = vmatpush1.bf16.msra.mxu1 %v5305_v16  ;;  %v5394_v15 = vld [vmem:[#allocation5 + $0xd84] ss:$16 sps:$4 sm:$0xff]   ;;  %v5397_v16 = vld [vmem:[#allocation5 + $0xd8c] ss:$16 sps:$4 sm:$0xff]  }
 0x35d   :  { %2991 = vmatprep.subr.bf16.mxu0 %v5310_v17  ;;  %3077 = vmatprep.subr.bf16.mxu1 %v5313_v18  ;;  %v5392_v17 = vld [vmem:[#allocation5 + $0xd80] ss:$16 sps:$4 sm:$0xff]   ;;  %v5395_v18 = vld [vmem:[#allocation5 + $0xd88] ss:$16 sps:$4 sm:$0xff]  }
 0x360   :  { %2992 = vmatpush1.bf16.msra.mxu0 %v5308_v19  ;;  %3078 = vmatpush1.bf16.msra.mxu1 %v5311_v20  ;;  %v5400_v19 = vld [vmem:[#allocation5 + $0xda4] ss:$16 sps:$4 sm:$0xff]   ;;  %v5403_v20 = vld [vmem:[#allocation5 + $0xdac] ss:$16 sps:$4 sm:$0xff]  }
 0x361   :  { %2993 = vmatprep.subr.bf16.mxu0 %v5316_v21  ;;  %3079 = vmatprep.subr.bf16.mxu1 %v5319_v22  ;;  %v5398_v21 = vld [vmem:[#allocation5 + $0xda0] ss:$16 sps:$4 sm:$0xff]   ;;  %v5401_v22 = vld [vmem:[#allocation5 + $0xda8] ss:$16 sps:$4 sm:$0xff]  }
 0x364   :  { %2994 = vmatpush1.bf16.msra.mxu0 %v5314_v23  ;;  %3080 = vmatpush1.bf16.msra.mxu1 %v5317_v25  ;;  %v5406_v23 = vld [vmem:[#allocation5 + $0xdc4] ss:$16 sps:$4 sm:$0xff]   ;;  %v5409_v25 = vld [vmem:[#allocation5 + $0xdcc] ss:$16 sps:$4 sm:$0xff]  }
 0x365   :  { %3932 = vmatprep.subr.bf16.mxu0 %v5322_v27  ;;  %4018 = vmatprep.subr.bf16.mxu1 %v5325_v28  ;;  %v5407_v27 = vld [vmem:[#allocation5 + $0xdc8] ss:$16 sps:$4 sm:$0xff]   ;;  %v5412_v28 = vld [vmem:[#allocation5 + $0xde4] ss:$16 sps:$4 sm:$0xff]  }
 0x367   :  { %2996 = vmatmul.mubr.bf16.vlgmr.msra.gmra.mrb[8].mxu0 %v2122_v31  ;;  %3082 = vmatmul.mubr.bf16.vlgmr.msra.gmra.mrb[8].mxu1 %v2122_v31  ;;  %v5413_v31 = vld [vmem:[#allocation5 + $0xde8] ss:$16 sps:$4 sm:$0xff]  }
 0x368   :  { %3933 = vmatpush1.bf16.msra.mxu0 %v5320_v29  ;;  %4019 = vmatpush1.bf16.msra.mxu1 %v5323_v30  ;;  %v5415_v29 = vld [vmem:[#allocation5 + $0xdec] ss:$16 sps:$4 sm:$0xff]   ;;  %v5410_v30 = vld [vmem:[#allocation5 + $0xde0] ss:$16 sps:$4 sm:$0xff]  }
 0x369   :  { %3934 = vmatprep.subr.bf16.mxu0 %v5328_v32  ;;  %4020 = vmatprep.subr.bf16.mxu1 %v5331_v33  ;;  %v5418_v32 = vld [vmem:[#allocation5 + $0xe04] ss:$16 sps:$4 sm:$0xff]   ;;  %v5421_v33 = vld [vmem:[#allocation5 + $0xe0c] ss:$16 sps:$4 sm:$0xff]  }
 0x36c   :  { %3935 = vmatpush1.bf16.msra.mxu0 %v5326_v34  ;;  %4021 = vmatpush1.bf16.msra.mxu1 %v5329_v35  ;;  %v2254_v34 = vld [vmem:[#allocation7 + $0x8] sm:$0xf] }
 0x36d   :  { %3936 = vmatprep.subr.bf16.mxu0 %v5334_v36  ;;  %4022 = vmatprep.subr.bf16.mxu1 %v5337_v37  ;;  %v2259_v35 = vrot.slane %v2254_v34, %v5723_v1  ;;  %v2267_v36 = vrot.slane %v2254_v34, %v5725_v8  ;;  %v2263_v37 = vrot.slane %v2254_v34, %v5727_v2 }
 0x370   :  { %3937 = vmatpush1.bf16.msra.mxu0 %v5332_v38  ;;  %4023 = vmatpush1.bf16.msra.mxu1 %v5335_v39  ;;  %v2271_v38 = vrot.slane %v2254_v34, %v5729_v54  ;;  %v2276_v39 = vpack.c.bf16 %v2259_v35, %v2259_v35  ;;  %v5449_v34 = vld [vmem:[#allocation5 + $0xea8] ss:$16 sps:$4 sm:$0xff]   ;;  %v5454_v35 = vld [vmem:[#allocation5 + $0xec4] ss:$16 sps:$4 sm:$0xff]  }
 0x371   :  { %3938 = vmatprep.subr.bf16.mxu0 %v5340_v13  ;;  %4024 = vmatprep.subr.bf16.mxu1 %v5343_v40  ;;  %v2278_v13 = vpack.c.bf16 %v2267_v36, %v2267_v36  ;;  %v2277_v40 = vpack.c.bf16 %v2263_v37, %v2263_v37  ;;  %v5457_v36 = vld [vmem:[#allocation5 + $0xecc] ss:$16 sps:$4 sm:$0xff]   ;;  %v5452_v37 = vld [vmem:[#allocation5 + $0xec0] ss:$16 sps:$4 sm:$0xff]  }
 0x374   :  { %3939 = vmatpush1.bf16.msra.mxu0 %v5338_v41  ;;  %4025 = vmatpush1.bf16.msra.mxu1 %v5341_v42  ;;  %v2279_v41 = vpack.c.bf16 %v2271_v38, %v2271_v38  ;;  %v3097_v42 = vpack.i.b16 %v2276_v39, %v2276_v39  ;;  %v5455_v38 = vld [vmem:[#allocation5 + $0xec8] ss:$16 sps:$4 sm:$0xff]   ;;  %v5460_v39 = vld [vmem:[#allocation5 + $0xee4] ss:$16 sps:$4 sm:$0xff]  }
 0x375   :  { %3940 = vmatprep.subr.bf16.mxu0 %v5346_v43  ;;  %4026 = vmatprep.subr.bf16.mxu1 %v5349_v44  ;;  %v3111_v43 = vpack.i.b16 %v2278_v13, %v2278_v13  ;;  %v3104_v44 = vpack.i.b16 %v2277_v40, %v2277_v40  ;;  %v5463_v13 = vld [vmem:[#allocation5 + $0xeec] ss:$16 sps:$4 sm:$0xff]   ;;  %v5458_v40 = vld [vmem:[#allocation5 + $0xee0] ss:$16 sps:$4 sm:$0xff]  }
 0x378   :  { %3941 = vmatpush1.bf16.msra.mxu0 %v5344_v45  ;;  %4027 = vmatpush1.bf16.msra.mxu1 %v5347_v46  ;;  %v3118_v45 = vpack.i.b16 %v2279_v41, %v2279_v41  ;;  %v5461_v41 = vld [vmem:[#allocation5 + $0xee8] ss:$16 sps:$4 sm:$0xff]  }
 0x379   :  { %3942 = vmatprep.subr.bf16.mxu0 %v5352_v47  ;;  %4028 = vmatprep.subr.bf16.mxu1 %v5355_v48 }
 0x37c   :  { %3943 = vmatpush1.bf16.msra.mxu0 %v5350_v49  ;;  %4029 = vmatpush1.bf16.msra.mxu1 %v5353_v24  ;;  %v3102_v24 = vrot.slane %v3097_v42, %v5723_v1  ;;  %v5466_v42 = vld [vmem:[#allocation5 + $0xf04] ss:$16 sps:$4 sm:$0xff]  }
 0x37d   :  { %3944 = vmatprep.subr.bf16.mxu0 %v5358_v50  ;;  %4030 = vmatprep.subr.bf16.mxu1 %v5361_v51  ;;  %v3116_v50 = vrot.slane %v3111_v43, %v5723_v1  ;;  %v5469_v43 = vld [vmem:[#allocation5 + $0xf0c] ss:$16 sps:$4 sm:$0xff]  }
 0x380   :  { %3945 = vmatpush1.bf16.msra.mxu0 %v5356_v52  ;;  %4031 = vmatpush1.bf16.msra.mxu1 %v5359_v0  ;;  %v3109_v0 = vrot.slane %v3104_v44, %v5723_v1  ;;  %v5464_v44 = vld [vmem:[#allocation5 + $0xf00] ss:$16 sps:$4 sm:$0xff]  }
 0x381   :  { %3946 = vmatprep.subr.bf16.mxu0 %v5364_v7  ;;  %4032 = vmatprep.subr.bf16.mxu1 %v5367_v9  ;;  %v3123_v7 = vrot.slane %v3118_v45, %v5723_v1  ;;  %v5467_v45 = vld [vmem:[#allocation5 + $0xf08] ss:$16 sps:$4 sm:$0xff]  }
 0x384   :  { %3947 = vmatpush1.bf16.msra.mxu0 %v5362_v10  ;;  %4033 = vmatpush1.bf16.msra.mxu1 %v5365_v55 }
 0x385   :  { %3948 = vmatprep.subr.bf16.mxu0 %v5370_v56  ;;  %4034 = vmatprep.subr.bf16.mxu1 %v5373_v3 }
 0x388   :  { %3949 = vmatpush1.bf16.msra.mxu0 %v5368_v57  ;;  %4035 = vmatpush1.bf16.msra.mxu1 %v5371_v53 }
 0x389   :  { %3950 = vmatprep.subr.bf16.mxu0 %v5376_v58  ;;  %4036 = vmatprep.subr.bf16.mxu1 %v5379_v59 }
 0x38c   :  { %3951 = vmatpush1.bf16.msra.mxu0 %v5374_v60  ;;  %4037 = vmatpush1.bf16.msra.mxu1 %v5377_v61 }
 0x38d   :  { %3952 = vmatprep.subr.bf16.mxu0 %v5382_v62  ;;  %4038 = vmatprep.subr.bf16.mxu1 %v5385_v63 }
 0x390   :  { %3953 = vmatpush1.bf16.msra.mxu0 %v5380_v4  ;;  %4039 = vmatpush1.bf16.msra.mxu1 %v5383_v5  ;;  %v5416_v5 = vld [vmem:[#allocation5 + $0xe00] ss:$16 sps:$4 sm:$0xff]  }
 0x391   :  { %3954 = vmatprep.subr.bf16.mxu0 %v5388_v6  ;;  %4040 = vmatprep.subr.bf16.mxu1 %v5391_v11  ;;  %v5419_v6 = vld [vmem:[#allocation5 + $0xe08] ss:$16 sps:$4 sm:$0xff]  }
 0x394   :  { %3955 = vmatpush1.bf16.msra.mxu0 %v5386_v12  ;;  %4041 = vmatpush1.bf16.msra.mxu1 %v5389_v14  ;;  %v5424_v12 = vld [vmem:[#allocation5 + $0xe24] ss:$16 sps:$4 sm:$0xff]   ;;  %v5427_v14 = vld [vmem:[#allocation5 + $0xe2c] ss:$16 sps:$4 sm:$0xff]  }
 0x395   :  { %3956 = vmatprep.subr.bf16.mxu0 %v5394_v15  ;;  %4042 = vmatprep.subr.bf16.mxu1 %v5397_v16  ;;  %v5422_v16 = vld [vmem:[#allocation5 + $0xe20] ss:$16 sps:$4 sm:$0xff]  }
 0x398   :  { %3957 = vmatpush1.bf16.msra.mxu0 %v5392_v17  ;;  %4043 = vmatpush1.bf16.msra.mxu1 %v5395_v18  ;;  %v5425_v17 = vld [vmem:[#allocation5 + $0xe28] ss:$16 sps:$4 sm:$0xff]   ;;  %v5430_v18 = vld [vmem:[#allocation5 + $0xe44] ss:$16 sps:$4 sm:$0xff]  }
 0x399   :  { %3958 = vmatprep.subr.bf16.mxu0 %v5400_v19  ;;  %4044 = vmatprep.subr.bf16.mxu1 %v5403_v20  ;;  %v5433_v19 = vld [vmem:[#allocation5 + $0xe4c] ss:$16 sps:$4 sm:$0xff]   ;;  %v5428_v20 = vld [vmem:[#allocation5 + $0xe40] ss:$16 sps:$4 sm:$0xff]  }
 0x39c   :  { %3959 = vmatpush1.bf16.msra.mxu0 %v5398_v21  ;;  %4045 = vmatpush1.bf16.msra.mxu1 %v5401_v22  ;;  %v5431_v21 = vld [vmem:[#allocation5 + $0xe48] ss:$16 sps:$4 sm:$0xff]   ;;  %v5436_v22 = vld [vmem:[#allocation5 + $0xe64] ss:$16 sps:$4 sm:$0xff]  }
 0x39d   :  { %3960 = vmatprep.subr.bf16.mxu0 %v5406_v23  ;;  %4046 = vmatprep.subr.bf16.mxu1 %v5409_v25  ;;  %v5439_v23 = vld [vmem:[#allocation5 + $0xe6c] ss:$16 sps:$4 sm:$0xff]   ;;  %v5434_v25 = vld [vmem:[#allocation5 + $0xe60] ss:$16 sps:$4 sm:$0xff]  }
 0x3a0   :  { %3961 = vmatpush1.bf16.msra.mxu0 %v5404_v26  ;;  %4047 = vmatpush1.bf16.msra.mxu1 %v5407_v27  ;;  %v5437_v26 = vld [vmem:[#allocation5 + $0xe68] ss:$16 sps:$4 sm:$0xff]   ;;  %v5442_v27 = vld [vmem:[#allocation5 + $0xe84] ss:$16 sps:$4 sm:$0xff]  }
 0x3a1   :  { %3962 = vmatprep.subr.bf16.mxu0 %v5412_v28  ;;  %4048 = vmatprep.subr.bf16.mxu1 %v5415_v29  ;;  %v5445_v28 = vld [vmem:[#allocation5 + $0xe8c] ss:$16 sps:$4 sm:$0xff]   ;;  %v5440_v29 = vld [vmem:[#allocation5 + $0xe80] ss:$16 sps:$4 sm:$0xff]  }
 0x3a4   :  { %3963 = vmatpush1.bf16.msra.mxu0 %v5410_v30  ;;  %4049 = vmatpush1.bf16.msra.mxu1 %v5413_v31  ;;  %v5443_v30 = vld [vmem:[#allocation5 + $0xe88] ss:$16 sps:$4 sm:$0xff]   ;;  %v5448_v31 = vld [vmem:[#allocation5 + $0xea4] ss:$16 sps:$4 sm:$0xff]  }
 0x3a5   :  { %3975 = vmatprep.subr.bf16.mxu0 %v5418_v32  ;;  %4061 = vmatprep.subr.bf16.mxu1 %v5421_v33  ;;  %v5451_v32 = vld [vmem:[#allocation5 + $0xeac] ss:$16 sps:$4 sm:$0xff]   ;;  %v5446_v33 = vld [vmem:[#allocation5 + $0xea0] ss:$16 sps:$4 sm:$0xff]  }
 0x43a   :  { %v2997_v46 = vpop.f32.mrb[8].mxu0  ;;  %v3083_v47 = vpop.f32.mrb[8].mxu1 }
 0x43b   :  { %v2999_v48 = vpop.f32.mrb[9].mxu0  ;;  %v3085_v49 = vpop.f32.mrb[9].mxu1 }
 0x43c   :  { %v3001_v51 = vpop.f32.mrb[10].mxu0  ;;  %v3087_v52 = vpop.f32.mrb[10].mxu1 }
 0x43d   :  { %v3092_v9 = vpack.c.bf16 %v3001_v51, %v2997_v46  ;;  %v3094_v10 = vpack.c.bf16 %v3087_v52, %v3083_v47  ;;  %v3003_v55 = vpop.f32.mrb[11].mxu0  ;;  %v3089_v56 = vpop.f32.mrb[11].mxu1  ;;  %v5472_v46 = vld [vmem:[#allocation5 + $0xf24] ss:$16 sps:$4 sm:$0xff]   ;;  %v5475_v47 = vld [vmem:[#allocation5 + $0xf2c] ss:$16 sps:$4 sm:$0xff]  }
 0x43e   :  { %v3093_v3 = vpack.c.bf16 %v3003_v55, %v2999_v48  ;;  %v3095_v57 = vpack.c.bf16 %v3089_v56, %v3085_v49  ;;  %v5470_v48 = vld [vmem:[#allocation5 + $0xf20] ss:$16 sps:$4 sm:$0xff]   ;;  %v5473_v49 = vld [vmem:[#allocation5 + $0xf28] ss:$16 sps:$4 sm:$0xff]   ;;  %v5490_v55 = vld [vmem:[#allocation5 + $0xf84] ss:$16 sps:$4 sm:$0xff]  }
 0x43f   :  { %v3124_v53 = vadd.bf16 %v3102_v24, %v3092_v9  ;;  %v5763_v58 = vadd.bf16 %v3116_v50, %v3094_v10  ;;  %v5478_v24 = vld [vmem:[#allocation5 + $0xf44] ss:$16 sps:$4 sm:$0xff]   ;;  %v5481_v50 = vld [vmem:[#allocation5 + $0xf4c] ss:$16 sps:$4 sm:$0xff]   ;;  %v5476_v51 = vld [vmem:[#allocation5 + $0xf40] ss:$16 sps:$4 sm:$0xff]  }
 0x440   :  { %v3125_v59 = vadd.bf16 %v3109_v0, %v3093_v3  ;;  %v3127_v60 = vadd.bf16 %v3123_v7, %v3095_v57  ;;  %v5479_v52 = vld [vmem:[#allocation5 + $0xf48] ss:$16 sps:$4 sm:$0xff]   ;;  %v5484_v0 = vld [vmem:[#allocation5 + $0xf64] ss:$16 sps:$4 sm:$0xff]   ;;  %v5487_v7 = vld [vmem:[#allocation5 + $0xf6c] ss:$16 sps:$4 sm:$0xff]  }
 0x441   :  { %v3128_v61 = vmul.bf16 1045249613, %v3124_v53  ;;  %v5482_v9 = vld [vmem:[#allocation5 + $0xf60] ss:$16 sps:$4 sm:$0xff]   ;;  %v5485_v10 = vld [vmem:[#allocation5 + $0xf68] ss:$16 sps:$4 sm:$0xff]  }
 0x442   :  { %v3129_v62 = vmul.bf16 1045249613, %v3125_v59  ;;  %v3131_v63 = vmul.bf16 1045249613, %v3127_v60  ;;  %v5493_v56 = vld [vmem:[#allocation5 + $0xf8c] ss:$16 sps:$4 sm:$0xff]  }
 0x443   :  { %v3132_v11 = vmax.bf16 %v3128_v61, %v3124_v53  ;;  %v5488_v3 = vld [vmem:[#allocation5 + $0xf80] ss:$16 sps:$4 sm:$0xff]   ;;  %v5491_v57 = vld [vmem:[#allocation5 + $0xf88] ss:$16 sps:$4 sm:$0xff]   ;;  %v5496_v53 = vld [vmem:[#allocation5 + $0xfa4] ss:$16 sps:$4 sm:$0xff]  }
 0x444   :  { %v3133_v4 = vmax.bf16 %v3129_v62, %v3125_v59  ;;  %v3135_v15 = vmax.bf16 %v3131_v63, %v3127_v60  ;;  %v5499_v59 = vld [vmem:[#allocation5 + $0xfac] ss:$16 sps:$4 sm:$0xff]   ;;  %v5494_v60 = vld [vmem:[#allocation5 + $0xfa0] ss:$16 sps:$4 sm:$0xff]   ;;  %v5497_v61 = vld [vmem:[#allocation5 + $0xfa8] ss:$16 sps:$4 sm:$0xff]  }
 0x445   :  { %v5502_v62 = vld [vmem:[#allocation5 + $0xfc4] ss:$16 sps:$4 sm:$0xff]   ;;  %v5505_v63 = vld [vmem:[#allocation5 + $0xfcc] ss:$16 sps:$4 sm:$0xff]  }
 0x446   :  { %3964 = vmatprep.mubr.bf16.mxu0 %v3133_v4  ;;  %4050 = vmatprep.mubr.bf16.mxu1 %v3133_v4  ;;  %v5500_v4 = vld [vmem:[#allocation5 + $0xfc0] ss:$16 sps:$4 sm:$0xff]  }
 0x447   :  { %3965 = vmatmul.mubr.bf16.vlgmr.msra.gmra.mrb[12].mxu0 %v3132_v11  ;;  %4051 = vmatmul.mubr.bf16.vlgmr.msra.gmra.mrb[12].mxu1 %v3132_v11  ;;  %v5511_v11 = vld [vmem:[#allocation5 + $0xfec] ss:$16 sps:$4 sm:$0xff]  }
 0x448   :  { %3976 = vmatpush1.bf16.msra.mxu0 %v5416_v5  ;;  %4062 = vmatpush1.bf16.msra.mxu1 %v5419_v6  ;;  %v5503_v5 = vld [vmem:[#allocation5 + $0xfc8] ss:$16 sps:$4 sm:$0xff]   ;;  %v5508_v6 = vld [vmem:[#allocation5 + $0xfe4] ss:$16 sps:$4 sm:$0xff]  }
 0x449   :  { %4007 = vmatprep.mubr.bf16.mxu0 %v3135_v15  ;;  %4093 = vmatprep.mubr.bf16.mxu1 %v3135_v15  ;;  %v3130_v15 = vmul.bf16 1045249613, %v5763_v58 }
 0x44a   :  { %3977 = vmatprep.subr.bf16.mxu0 %v5424_v12  ;;  %4063 = vmatprep.subr.bf16.mxu1 %v5427_v14  ;;  %v5506_v12 = vld [vmem:[#allocation5 + $0xfe0] ss:$16 sps:$4 sm:$0xff]   ;;  %v5509_v14 = vld [vmem:[#allocation5 + $0xfe8] ss:$16 sps:$4 sm:$0xff]  }
 0x44c   :  { %3978 = vmatpush1.bf16.msra.mxu0 %v5422_v16  ;;  %4064 = vmatpush1.bf16.msra.mxu1 %v5425_v17  ;;  %v3134_v16 = vmax.bf16 %v3130_v15, %v5763_v58  ;;  %v3266_v17 = vld [vmem:[#allocation7 + $0xc] sm:$0xf] }
 0x44d   :  { %3979 = vmatprep.subr.bf16.mxu0 %v5430_v18  ;;  %4065 = vmatprep.subr.bf16.mxu1 %v5433_v19  ;;  %v3271_v18 = vrot.slane %v3266_v17, %v5723_v1  ;;  %v3279_v19 = vrot.slane %v3266_v17, %v5725_v8 }
 0x450   :  { %3980 = vmatpush1.bf16.msra.mxu0 %v5428_v20  ;;  %4066 = vmatpush1.bf16.msra.mxu1 %v5431_v21  ;;  %v3275_v20 = vrot.slane %v3266_v17, %v5727_v2  ;;  %v3283_v21 = vrot.slane %v3266_v17, %v5729_v54 }
 0x451   :  { %3981 = vmatprep.subr.bf16.mxu0 %v5436_v22  ;;  %4067 = vmatprep.subr.bf16.mxu1 %v5439_v23  ;;  %v3288_v22 = vpack.c.bf16 %v3271_v18, %v3271_v18  ;;  %v3290_v23 = vpack.c.bf16 %v3279_v19, %v3279_v19 }
 0x454   :  { %3982 = vmatpush1.bf16.msra.mxu0 %v5434_v25  ;;  %4068 = vmatpush1.bf16.msra.mxu1 %v5437_v26  ;;  %v3289_v25 = vpack.c.bf16 %v3275_v20, %v3275_v20  ;;  %v3291_v26 = vpack.c.bf16 %v3283_v21, %v3283_v21 }
 0x455   :  { %3983 = vmatprep.subr.bf16.mxu0 %v5442_v27  ;;  %4069 = vmatprep.subr.bf16.mxu1 %v5445_v28  ;;  %v4109_v27 = vpack.i.b16 %v3288_v22, %v3288_v22  ;;  %v4123_v28 = vpack.i.b16 %v3290_v23, %v3290_v23 }
 0x457   :  { %v4128_v8 = vrot.slane %v4123_v28, %v5723_v1 }
 0x458   :  { %3984 = vmatpush1.bf16.msra.mxu0 %v5440_v29  ;;  %4070 = vmatpush1.bf16.msra.mxu1 %v5443_v30  ;;  %v4116_v29 = vpack.i.b16 %v3289_v25, %v3289_v25  ;;  %v4130_v30 = vpack.i.b16 %v3291_v26, %v3291_v26 }
 0x459   :  { %3985 = vmatprep.subr.bf16.mxu0 %v5448_v31  ;;  %4071 = vmatprep.subr.bf16.mxu1 %v5451_v32 }
 0x45a   :  { %v4121_v54 = vrot.slane %v4116_v29, %v5723_v1 }
 0x45c   :  { %3986 = vmatpush1.bf16.msra.mxu0 %v5446_v33  ;;  %4072 = vmatpush1.bf16.msra.mxu1 %v5449_v34  ;;  %v4114_v34 = vrot.slane %v4109_v27, %v5723_v1 }
 0x45d   :  { %3987 = vmatprep.subr.bf16.mxu0 %v5454_v35  ;;  %4073 = vmatprep.subr.bf16.mxu1 %v5457_v36  ;;  %v4135_v36 = vrot.slane %v4130_v30, %v5723_v1 }
 0x460   :  { %3988 = vmatpush1.bf16.msra.mxu0 %v5452_v37  ;;  %4074 = vmatpush1.bf16.msra.mxu1 %v5455_v38 }
 0x461   :  { %3989 = vmatprep.subr.bf16.mxu0 %v5460_v39  ;;  %4075 = vmatprep.subr.bf16.mxu1 %v5463_v13 }
 0x464   :  { %3990 = vmatpush1.bf16.msra.mxu0 %v5458_v40  ;;  %4076 = vmatpush1.bf16.msra.mxu1 %v5461_v41 }
 0x465   :  { %3991 = vmatprep.subr.bf16.mxu0 %v5466_v42  ;;  %4077 = vmatprep.subr.bf16.mxu1 %v5469_v43 }
 0x468   :  { %3992 = vmatpush1.bf16.msra.mxu0 %v5464_v44  ;;  %4078 = vmatpush1.bf16.msra.mxu1 %v5467_v45 }
 0x469   :  { %3993 = vmatprep.subr.bf16.mxu0 %v5472_v46  ;;  %4079 = vmatprep.subr.bf16.mxu1 %v5475_v47 }
 0x46c   :  { %3994 = vmatpush1.bf16.msra.mxu0 %v5470_v48  ;;  %4080 = vmatpush1.bf16.msra.mxu1 %v5473_v49 }
 0x46d   :  { %3995 = vmatprep.subr.bf16.mxu0 %v5478_v24  ;;  %4081 = vmatprep.subr.bf16.mxu1 %v5481_v50 }
 0x470   :  { %3996 = vmatpush1.bf16.msra.mxu0 %v5476_v51  ;;  %4082 = vmatpush1.bf16.msra.mxu1 %v5479_v52 }
 0x471   :  { %3997 = vmatprep.subr.bf16.mxu0 %v5484_v0  ;;  %4083 = vmatprep.subr.bf16.mxu1 %v5487_v7 }
 0x474   :  { %3998 = vmatpush1.bf16.msra.mxu0 %v5482_v9  ;;  %4084 = vmatpush1.bf16.msra.mxu1 %v5485_v10 }
 0x475   :  { %3999 = vmatprep.subr.bf16.mxu0 %v5490_v55  ;;  %4085 = vmatprep.subr.bf16.mxu1 %v5493_v56 }
 0x478   :  { %4000 = vmatpush1.bf16.msra.mxu0 %v5488_v3  ;;  %4086 = vmatpush1.bf16.msra.mxu1 %v5491_v57 }
 0x479   :  { %4001 = vmatprep.subr.bf16.mxu0 %v5496_v53  ;;  %4087 = vmatprep.subr.bf16.mxu1 %v5499_v59 }
 0x47c   :  { %4002 = vmatpush1.bf16.msra.mxu0 %v5494_v60  ;;  %4088 = vmatpush1.bf16.msra.mxu1 %v5497_v61 }
 0x47d   :  { %4003 = vmatprep.subr.bf16.mxu0 %v5502_v62  ;;  %4089 = vmatprep.subr.bf16.mxu1 %v5505_v63 }
 0x480   :  { %4004 = vmatpush1.bf16.msra.mxu0 %v5500_v4  ;;  %4090 = vmatpush1.bf16.msra.mxu1 %v5503_v5 }
 0x481   :  { %4005 = vmatprep.subr.bf16.mxu0 %v5508_v6  ;;  %4091 = vmatprep.subr.bf16.mxu1 %v5511_v11 }
 0x484   :  { %4006 = vmatpush1.bf16.msra.mxu0 %v5506_v12  ;;  %4092 = vmatpush1.bf16.msra.mxu1 %v5509_v14 }
 0x487   :  { %4008 = vmatmul.mubr.bf16.vlgmr.msra.gmra.mrb[12].mxu0 %v3134_v16  ;;  %4094 = vmatmul.mubr.bf16.vlgmr.msra.gmra.mrb[12].mxu1 %v3134_v16 }
 0x55a   :  { %v4009_v58 = vpop.f32.mrb[12].mxu0  ;;  %v4095_v31 = vpop.f32.mrb[12].mxu1 }
 0x55b   :  { %v4011_v32 = vpop.f32.mrb[13].mxu0  ;;  %v4097_v33 = vpop.f32.mrb[13].mxu1 }
 0x55c   :  { %v4013_v35 = vpop.f32.mrb[14].mxu0  ;;  %v4099_v2 = vpop.f32.mrb[14].mxu1 }
 0x55d   :  { %v4104_v37 = vpack.c.bf16 %v4013_v35, %v4009_v58  ;;  %v4106_v38 = vpack.c.bf16 %v4099_v2, %v4095_v31  ;;  %v4015_v39 = vpop.f32.mrb[15].mxu0  ;;  %v4101_v13 = vpop.f32.mrb[15].mxu1 }
 0x55e   :  { %v4105_v40 = vpack.c.bf16 %v4015_v39, %v4011_v32  ;;  %v4107_v41 = vpack.c.bf16 %v4101_v13, %v4097_v33 }
 0x55f   :  { %v4136_v42 = vadd.bf16 %v4114_v34, %v4104_v37  ;;  %v4138_v43 = vadd.bf16 %v4128_v8, %v4106_v38 }
 0x560   :  { %v4137_v44 = vadd.bf16 %v4121_v54, %v4105_v40  ;;  %v4139_v45 = vadd.bf16 %v4135_v36, %v4107_v41 }
 0x561   :  { %v4140_v46 = vmul.bf16 1045249613, %v4136_v42  ;;  %v4142_v47 = vmul.bf16 1045249613, %v4138_v43 }
 0x562   :  { %v4141_v48 = vmul.bf16 1045249613, %v4137_v44  ;;  %v4143_v49 = vmul.bf16 1045249613, %v4139_v45 }
 0x563   :  { %v4144_v24 = vmax.bf16 %v4140_v46, %v4136_v42  ;;  %v4146_v50 = vmax.bf16 %v4142_v47, %v4138_v43 }
 0x564   :  { %v4145_v51 = vmax.bf16 %v4141_v48, %v4137_v44  ;;  %v4147_v52 = vmax.bf16 %v4143_v49, %v4139_v45 }
 0x565   :  { %v4148_v0 = vunpack.c.l.bf16 %v4144_v24  ;;  %v4152_v1 = vunpack.c.h.bf16 %v4144_v24  ;;  %v4150_v7 = vunpack.c.l.bf16 %v4146_v50  ;;  %v4154_v9 = vunpack.c.h.bf16 %v4146_v50 }
 0x566   :  { %v4149_v10 = vunpack.c.l.bf16 %v4145_v51  ;;  %v4153_v55 = vunpack.c.h.bf16 %v4145_v51  ;;  %v4151_v56 = vunpack.c.l.bf16 %v4147_v52  ;;  %v4155_v3 = vunpack.c.h.bf16 %v4147_v52 }
 0x567   :  { %v4156_v57 = vmul.f32 1.4142135, %v4148_v0  ;;  %v4160_v53 = vmul.f32 1.4142135, %v4152_v1  ;;  %v4158_v59 = vmul.f32 1.4142135, %v4150_v7 }
 0x568   :  { %v4162_v60 = vmul.f32 1.4142135, %v4154_v9  ;;  %v4157_v61 = vmul.f32 1.4142135, %v4149_v10  ;;  %v4161_v62 = vmul.f32 1.4142135, %v4153_v55 }
 0x569   :  { %4164 = vst [vmem:[#allocation8] sm:$0xff] %v4156_v57  ;;  %4168 = vst [vmem:[#allocation8 + $0x20] sm:$0xff] %v4160_v53  ;;  %v4159_v63 = vmul.f32 1.4142135, %v4151_v56  ;;  %v4163_v4 = vmul.f32 1.4142135, %v4155_v3 }
 0x56a   :  { %4166 = vst [vmem:[#allocation8 + $0x10] sm:$0xff] %v4158_v59  ;;  %4170 = vst [vmem:[#allocation8 + $0x30] sm:$0xff] %v4162_v60 }
 0x56b   :  { %4165 = vst [vmem:[#allocation8 + $0x8] sm:$0xff] %v4157_v61  ;;  %4169 = vst [vmem:[#allocation8 + $0x28] sm:$0xff] %v4161_v62 }
 0x56c   :  { %4167 = vst [vmem:[#allocation8 + $0x18] sm:$0xff] %v4159_v63  ;;  %4171 = vst [vmem:[#allocation8 + $0x38] sm:$0xff] %v4163_v4 }
 0x56d   :  { %5593 = shalt.err (!%p5590_p0)
}
 0x56e   :  { %s5594_s29 = scalar_lea.hbm %s5793_s3, 1024 }
 0x56f   :  { %p5595_p1 = scmp.ne.s32.totalorder %s5793_s3, %s5594_s29  ;;  %p5598_p2 = scmp.lt.u32.totalorder %s5594_s29, %s5793_s3 }
 0x571   :  { %p5600_p3 = pnand %p5598_p2, %p5595_p1 }
 0x573   :  { %5603 = shalt.err (!%p5600_p3)
}
 0x574   :  { %4183 = dma.vmem_to_hbm [thread:$0]  %s4178_s25, 1024, %s5793_s3, [#allocation4], %s5614_s1, %s5614_s1, %s5615_s9  }
 0x575   :  { %5608 = dma.done.wait [#allocation4], 1024  }
 0x576   :  { %5609 = vsyncadd [#allocation4], 4294966272 }
 0x577   :  { %4187 = vsyncpa [#allocation3], 1 }
 0x578   :  { %4188 = vsyncpa [#allocation6], 1 }
 0x579   :  { %4189 = vsyncpa [#allocation4], 1 }

</bundles_post_ra>
